<compile_context>
chip_gen: v6e
topology: v6e:2x2x1
jax: 0.10.0
libtpu: 0.0.40
codegen_flags: <defaults>
</compile_context>

<pallas_src>
import functools

import jax
import jax.numpy as jnp
import numpy as np
from jax.experimental import pallas as pl
from jax.experimental.pallas import tpu as pltpu


# ----------------------------------------------------------------------------
# Synthetic meta (keypoints / skeletons / hflip mappings), deterministic.
# ----------------------------------------------------------------------------
NUM_KEYPOINTS = 4                      # keypoints 0..3, hflip swaps (0,1),(2,3)
PIF_HFLIP_PERM = [1, 0, 3, 2]

SKELETON = [(0, 1), (0, 2), (1, 3)]    # hflip: conn0->conn0, conn1<->conn2
PAF_HFLIP_PERM = [0, 2, 1]

SKELETON_DENSE = [(0, 1), (2, 3), (0, 2), (1, 3)]
PAF_DENSE_HFLIP_PERM = [0, 1, 3, 2]

C_HID = 32
C_PIF = 2 * NUM_KEYPOINTS              # 8  : [conf_k ..., x_offset_k ...]
C_PAF = 2 * len(SKELETON)              # 6
C_PAF_DENSE = 2 * len(SKELETON_DENSE)  # 8
C_HEADS = C_PIF + C_PAF + C_PAF_DENSE  # 22 real output channels

C_FEAT = C_HID + 8                     # hidden + const-1 bias channel + pad (40)
N_PAD = 128                            # lane-dense output width (unmasked vst)

MAX_TILE_M = 2048                      # safe under v5e default scoped VMEM
TARGET_GRID_STEPS = 8                  # keep both v7x TCs busy on small inputs


def _round_up(x, m):
    return ((x + m - 1) // m) * m


def _k_in(cin):
    """HBM-side contraction width: 9*Cin real cols + 1 ones col, rounded to 8."""
    return _round_up(9 * cin + 1, 8)


def _choose_tile_m(m_total):
    tile = -(-m_total // TARGET_GRID_STEPS)          # cdiv
    tile = max(256, min(MAX_TILE_M, tile))
    return _round_up(tile, 256)


# ----------------------------------------------------------------------------
# Pallas kernel: fused base_net (im2col matmul + folded bias + ReLU) and the
# three heads (+ their biases, via a constant-1 feature) as one lane-dense
# matmul.  bf16 operands, f32 MXU accumulation, bf16 store.
# ----------------------------------------------------------------------------
def _fused_kernel(x_ref, wb_ref, wh_ref, o_ref):
    # base_net 3x3 conv as matmul; base bias folded via the ones-column in x,
    # plus a constant-1 feature channel that will carry the head biases.
    feat = jnp.dot(x_ref[...], wb_ref[...], preferred_element_type=jnp.float32)
    feat = jnp.maximum(feat, 0.0)
    # three 1x1-conv heads (+ biases) as a single MXU pass, 128-lane output.
    out = jnp.dot(feat.astype(jnp.bfloat16), wh_ref[...],
                  preferred_element_type=jnp.float32)
    o_ref[...] = out.astype(o_ref.dtype)


def _fused_base_heads(xk_bf16, wb_pad, wh_pad, tile_m):
    """xk_bf16: (M_pad, K_IN) bf16, M_pad % tile_m == 0. Returns (M_pad, N_PAD) bf16."""
    m_pad, k_in = xk_bf16.shape
    c_feat = wb_pad.shape[1]
    grid = (m_pad // tile_m,)

    flops = 2 * m_pad * (k_in * c_feat + c_feat * N_PAD)
    bytes_accessed = (m_pad * k_in * 2            # x rows, bf16
                      + m_pad * N_PAD * 2         # output slab, bf16
                      + (k_in * c_feat + c_feat * N_PAD) * 2)  # weights

    return pl.pallas_call(
        _fused_kernel,
        out_shape=jax.ShapeDtypeStruct((m_pad, N_PAD), jnp.bfloat16),
        grid=grid,
        in_specs=[
            pl.BlockSpec((tile_m, k_in), lambda i: (i, 0)),    # im2col rows
            pl.BlockSpec((k_in, c_feat), lambda i: (0, 0)),    # base weight (resident)
            pl.BlockSpec((c_feat, N_PAD), lambda i: (0, 0)),   # fused head weight+bias
        ],
        out_specs=pl.BlockSpec((tile_m, N_PAD), lambda i: (i, 0)),
        compiler_params=pltpu.CompilerParams(
            dimension_semantics=("parallel",)),
        cost_estimate=pl.CostEstimate(flops=flops, transcendentals=0,
                                      bytes_accessed=bytes_accessed),
    )(xk_bf16, wb_pad, wh_pad)


# ----------------------------------------------------------------------------
# Wrapper glue: im2col, ones-column, bf16 cast, parameter packing, hflip.
# ----------------------------------------------------------------------------
def _im2col(x_nchw):
    """NCHW -> (B*H*W, 9*Cin) rows of 3x3 patches (pad=1, stride=1)."""
    B, Cin, H, W = x_nchw.shape
    x = jnp.transpose(x_nchw, (0, 2, 3, 1))                      # NHWC
    xp = jnp.pad(x, ((0, 0), (1, 1), (1, 1), (0, 0)))
    patches = jnp.stack(
        [xp[:, dy:dy + H, dx:dx + W, :] for dy in range(3) for dx in range(3)],
        axis=3)                                                  # (B,H,W,9,Cin)
    return patches.reshape(B * H * W, 9 * Cin)


def _branch_rows(x_nchw, cin):
    """Per-branch im2col rows: real cols | ones col | small zero pad, in bf16."""
    rows = _im2col(x_nchw)
    m, k_raw = rows.shape
    k_in = _k_in(cin)
    ones = jnp.ones((m, 1), rows.dtype)
    zeros = jnp.zeros((m, k_in - k_raw - 1), rows.dtype)
    return jnp.concatenate([rows, ones, zeros], axis=1).astype(jnp.bfloat16)


def make_params(key, cin):
    ks = jax.random.split(key, 8)
    wb = 0.1 * jax.random.normal(ks[0], (9 * cin, C_HID), jnp.float32)
    bb = 0.1 * jax.random.normal(ks[1], (C_HID,), jnp.float32)
    w1 = 0.1 * jax.random.normal(ks[2], (C_HID, C_PIF), jnp.float32)
    b1 = 0.1 * jax.random.normal(ks[3], (C_PIF,), jnp.float32)
    w2 = 0.1 * jax.random.normal(ks[4], (C_HID, C_PAF), jnp.float32)
    b2 = 0.1 * jax.random.normal(ks[5], (C_PAF,), jnp.float32)
    w3 = 0.1 * jax.random.normal(ks[6], (C_HID, C_PAF_DENSE), jnp.float32)
    b3 = 0.1 * jax.random.normal(ks[7], (C_PAF_DENSE,), jnp.float32)
    return (wb, bb, w1, b1, w2, b2, w3, b3)


def pack_params(params, cin):
    """Fold base bias into the K-padded weight (matched by the ones column),
    add a constant-1 feature channel carrying the head biases, fuse & lane-pad
    the head weights.  Drops the separate head-bias input entirely."""
    wb, bb, w1, b1, w2, b2, w3, b3 = params
    k_raw = 9 * cin
    k_in = _k_in(cin)

    wb_pad = jnp.zeros((k_in, C_FEAT), jnp.float32)
    wb_pad = wb_pad.at[:k_raw, :C_HID].set(wb)
    wb_pad = wb_pad.at[k_raw, :C_HID].set(bb)     # base bias via ones column
    wb_pad = wb_pad.at[k_raw, C_HID].set(1.0)     # constant-1 feature channel

    wh = jnp.concatenate([w1, w2, w3], axis=1)    # (C_HID, 22)
    bh = jnp.concatenate([b1, b2, b3])            # (22,)
    wh_pad = jnp.zeros((C_FEAT, N_PAD), jnp.float32)
    wh_pad = wh_pad.at[:C_HID, :C_HEADS].set(wh)
    wh_pad = wh_pad.at[C_HID, :C_HEADS].set(bh)   # head bias via const-1 feature

    return wb_pad.astype(jnp.bfloat16), wh_pad.astype(jnp.bfloat16)


def _field_hflip(y, perm):
    """Spatially un-flip, permute field channels, negate x-offset components."""
    n = len(perm)
    p = jnp.asarray(perm, dtype=jnp.int32)
    y = jnp.flip(y, axis=3)
    conf = jnp.take(y[:, :n], p, axis=1)
    xoff = -jnp.take(y[:, n:], p, axis=1)
    return jnp.concatenate([conf, xoff], axis=1)


# ----------------------------------------------------------------------------
# ShellMultiScale.forward
# ----------------------------------------------------------------------------
def shell_multiscale_forward(x, packed, *, include_hflip=True):
    B, Cin, H, W = x.shape
    wb_pad, wh_pad = packed

    # 1) build all (hflip, reduction) branches; cheap glue in plain JAX.
    branches = []   # (bf16 im2col rows at K_IN, branch NCHW shape)
    for hflip in ([False, True] if include_hflip else [False]):
        for reduction in [1, 1.5, 2, 3, 5]:
            if reduction == 1.5:
                yidx = jnp.asarray([i for i in range(H) if i % 3 != 2], jnp.int32)
                xidx = jnp.asarray([i for i in range(W) if i % 3 != 2], jnp.int32)
                reduced = jnp.take(jnp.take(x, yidx, axis=2), xidx, axis=3)
            else:
                reduced = x[:, :, ::reduction, ::reduction]
            if hflip:
                reduced = jnp.flip(reduced, axis=3)
            branches.append((_branch_rows(reduced, Cin), reduced.shape))

    # 2) one pallas_call over all branches: concat along M, pad to TILE_M.
    xk = jnp.concatenate([rows for rows, _ in branches], axis=0)   # bf16
    m_total = xk.shape[0]
    tile_m = _choose_tile_m(m_total)
    m_pad = pl.cdiv(m_total, tile_m) * tile_m
    xk = jnp.pad(xk, ((0, m_pad - m_total), (0, 0)))
    slab = _fused_base_heads(xk, wb_pad, wh_pad, tile_m)   # (m_pad, 128) bf16

    # 3) split the lane-dense slab back into per-branch, per-head NCHW tensors.
    head_outputs = []
    off = 0
    for rows_in, (Bb, _, Hb, Wb) in branches:
        m_b = rows_in.shape[0]
        rows = slab[off:off + m_b]
        off += m_b

        def to_nchw(cols, Bb=Bb, Hb=Hb, Wb=Wb):
            return jnp.transpose(cols.reshape(Bb, Hb, Wb, -1), (0, 3, 1, 2))

        head_outputs.append(to_nchw(rows[:, :C_PIF]))
        head_outputs.append(to_nchw(rows[:, C_PIF:C_PIF + C_PAF]))
        head_outputs.append(to_nchw(rows[:, C_PIF + C_PAF:C_HEADS]))

    # 4) un-flip the mirrored head outputs (branches 5..9).
    if include_hflip:
        for mscale_i in range(5, 10):
            head_i = mscale_i * 3
            head_outputs[head_i] = _field_hflip(head_outputs[head_i],
                                                PIF_HFLIP_PERM)
            head_outputs[head_i + 1] = _field_hflip(head_outputs[head_i + 1],
                                                    PAF_HFLIP_PERM)
            head_outputs[head_i + 2] = _field_hflip(head_outputs[head_i + 2],
                                                    PAF_DENSE_HFLIP_PERM)
    # process_heads is None in this synthetic instantiation.
    return head_outputs


# ----------------------------------------------------------------------------
# Pure-JAX reference for one branch (mimics the kernel's bf16 rounding so the
# comparison tolerance can be tight).
# ----------------------------------------------------------------------------
def _reference_heads(x_nchw, packed):
    wb_pad, wh_pad = packed
    B, Cin, H, W = x_nchw.shape
    xk = _branch_rows(x_nchw, Cin).astype(jnp.float32)
    feat = jnp.maximum(xk @ wb_pad.astype(jnp.float32), 0.0)
    out = (feat.astype(jnp.bfloat16).astype(jnp.float32)
           @ wh_pad.astype(jnp.float32)).astype(jnp.bfloat16)

    def to_nchw(cols):
        return jnp.transpose(cols.reshape(B, H, W, -1), (0, 3, 1, 2))

    return (to_nchw(out[:, :C_PIF]),
            to_nchw(out[:, C_PIF:C_PIF + C_PAF]),
            to_nchw(out[:, C_PIF + C_PAF:C_HEADS]))


# ----------------------------------------------------------------------------
# Demo run.
# ----------------------------------------------------------------------------
if __name__ == "__main__":
    key = jax.random.PRNGKey(0)
    kx, kp = jax.random.split(key)

    B, Cin, H, W = 2, 4, 16, 16
    x = jax.random.normal(kx, (B, Cin, H, W), jnp.float32)
    params = make_params(kp, Cin)
    packed = pack_params(params, Cin)

    fwd = jax.jit(functools.partial(shell_multiscale_forward,
                                    include_hflip=True))
    outs = fwd(x, packed)
    for o in outs:
        jax.block_until_ready(o)

    # 2 hflip branches * 5 reductions * 3 heads = 30 outputs, all NCHW.
    assert len(outs) == 30
    assert outs[0].shape == (B, C_PIF, H, W)          # reduction 1, pif
    assert outs[1].shape == (B, C_PAF, H, W)          # reduction 1, paf
    assert outs[2].shape == (B, C_PAF_DENSE, H, W)    # reduction 1, paf dense
    assert outs[3].shape == (B, C_PIF, 11, 11)        # reduction 1.5 (i%3 != 2)
    assert outs[6].shape == (B, C_PIF, 8, 8)          # reduction 2, pif
    assert outs[7].shape == (B, C_PAF, 8, 8)          # reduction 2, paf
    assert outs[9].shape == (B, C_PIF, 6, 6)          # reduction 3
    assert outs[12].shape == (B, C_PIF, 4, 4)         # reduction 5
    assert outs[15].shape == (B, C_PIF, H, W)         # hflip branch, reduction 1

    # Numerical check of the fused kernel against a pure-JAX reference for the
    # first (no-flip, reduction 1) branch.
    ref = _reference_heads(x, packed)
    for got, want in zip(outs[:3], ref):
        np.testing.assert_allclose(np.asarray(got, dtype=np.float32),
                                   np.asarray(want, dtype=np.float32),
                                   rtol=2e-2, atol=2e-2)

    print("KERNEL_OK")
</pallas_src>

<mosaic_0001>
module attributes {stable_mosaic.version = 11 : i64} {
  func.func @_fused_kernel(%arg0: i32, %arg1: memref<256x40xbf16, #tpu.memory_space<vmem>>, %arg2: memref<40x40xbf16, #tpu.memory_space<vmem>>, %arg3: memref<40x128xbf16, #tpu.memory_space<vmem>>, %arg4: memref<256x128xbf16, #tpu.memory_space<vmem>>) attributes {dimension_semantics = [#tpu.dimension_semantics<parallel>], iteration_bounds = array<i64: 8>, scalar_prefetch = 0 : i64, scratch_operands = 0 : i64, tpu.core_type = #tpu.core_type<tc>, window_params = [{transform_indices = @transform_0, window_bounds = array<i64: 256, 40>}, {pipeline_mode = #tpu.pipeline_mode<synchronous>, transform_indices = @transform_1, window_bounds = array<i64: 40, 40>}, {pipeline_mode = #tpu.pipeline_mode<synchronous>, transform_indices = @transform_2, window_bounds = array<i64: 40, 128>}, {transform_indices = @transform_3, window_bounds = array<i64: 256, 128>}]} {
    %c0 = arith.constant 0 : index
    %c0_0 = arith.constant 0 : index
    %0 = vector.load %arg1[%c0, %c0_0] : memref<256x40xbf16, #tpu.memory_space<vmem>>, vector<256x40xbf16>
    %c0_1 = arith.constant 0 : index
    %c0_2 = arith.constant 0 : index
    %1 = vector.load %arg2[%c0_1, %c0_2] : memref<40x40xbf16, #tpu.memory_space<vmem>>, vector<40x40xbf16>
    %cst = arith.constant dense<0.000000e+00> : vector<256x40xf32>
    %2 = tpu.matmul %0, %1, %cst {dimension_numbers = #tpu.dot_dimension_numbers<[1], [0], [0], [1], [0, 0, 1, 1], [], []>} : vector<256x40xbf16>, vector<40x40xbf16>, vector<256x40xf32> -> vector<256x40xf32>
    %cst_3 = arith.constant 0.000000e+00 : f32
    %3 = vector.broadcast %cst_3 : f32 to vector<256x40xf32>
    %4 = arith.maximumf %2, %3 : vector<256x40xf32>
    %5 = arith.truncf %4 : vector<256x40xf32> to vector<256x40xbf16>
    %c0_4 = arith.constant 0 : index
    %c0_5 = arith.constant 0 : index
    %6 = vector.load %arg3[%c0_4, %c0_5] : memref<40x128xbf16, #tpu.memory_space<vmem>>, vector<40x128xbf16>
    %cst_6 = arith.constant dense<0.000000e+00> : vector<256x128xf32>
    %7 = tpu.matmul %5, %6, %cst_6 {dimension_numbers = #tpu.dot_dimension_numbers<[1], [0], [0], [1], [0, 0, 1, 1], [], []>} : vector<256x40xbf16>, vector<40x128xbf16>, vector<256x128xf32> -> vector<256x128xf32>
    %8 = arith.truncf %7 : vector<256x128xf32> to vector<256x128xbf16>
    %c0_7 = arith.constant 0 : index
    %c0_8 = arith.constant 0 : index
    %9 = vector.load %arg4[%c0_7, %c0_8] : memref<256x128xbf16, #tpu.memory_space<vmem>>, vector<256x128xbf16>
    tpu.vector_store %arg4[%c0_7, %c0_8], %8 {strides = array<i32>} : memref<256x128xbf16, #tpu.memory_space<vmem>>, vector<256x128xbf16>,
    return
  }
  func.func @transform_0(%arg0: i32) -> (i32, i32) {
    %c0_i32 = arith.constant 0 : i32
    %c0_i32_0 = arith.constant 0 : i32
    return %arg0, %c0_i32 : i32, i32
  }
  func.func @transform_1(%arg0: i32) -> (i32, i32) {
    %c0_i32 = arith.constant 0 : i32
    %c0_i32_0 = arith.constant 0 : i32
    %c0_i32_1 = arith.constant 0 : i32
    return %c0_i32, %c0_i32_0 : i32, i32
  }
  func.func @transform_2(%arg0: i32) -> (i32, i32) {
    %c0_i32 = arith.constant 0 : i32
    %c0_i32_0 = arith.constant 0 : i32
    %c0_i32_1 = arith.constant 0 : i32
    return %c0_i32, %c0_i32_0 : i32, i32
  }
  func.func @transform_3(%arg0: i32) -> (i32, i32) {
    %c0_i32 = arith.constant 0 : i32
    %c0_i32_0 = arith.constant 0 : i32
    return %arg0, %c0_i32 : i32, i32
  }
}

</mosaic_0001>

<bundles_post_ra>
// kernel: reverse.26
= control target key start
LH: loop header
LB: loop body
LE: loop exit
PB: predicated region body
PF: predicated region fallthrough
CT: control target
= control target key end

     0   :  { %v2_v0 = vlaneseq  ;;  %s359_s0 = inlined_call_operand.vmem [shape: bf16[2,3,4,4], index: 0, kind: input, shape index: {}]   ;;  %s360_s1 = inlined_call_operand.vmem [shape: bf16[2,3,4,4], index: 1, kind: output, shape index: {}]  }
   0x2   :  { %v3_v1 = vsub.s32 3, %v2_v0 }
   0x4   :  { %4 = vset.pattern.permute.xlu0 %v3_v1 }
   0x5   :  { %323 = vset.pattern.permute.xlu1 %v3_v1  ;;  %v25_v2 = vld [vmem:[%s359_s0 + $0x4] sm:$0xff]   ;;  %v21_v3 = vld [vmem:[%s359_s0] sm:$0xf]   ;;  %v324_v30 = vmov 0.0  }
   0x6   :  { %26 = vst [vmem:[#allocation1 + $0x4] sm:$0xff] %v25_v2   ;;  %22 = vst [vmem:[#allocation1] sm:$0xf] %v21_v3  }
   0xd   :  { %v129_v4 = vld [vmem:[#allocation1 + $0x4] sm:$0x3]  ;;  %v158_v5 = vld [vmem:[#allocation1] sm:$0x3]  ;;  %v113_v6 = vld [vmem:[#allocation1 + $0x6] sm:$0x3] }
   0xe   :  { %v130_v7 = vunpack.c.l.bf16 %v129_v4  ;;  %v159_v8 = vunpack.c.l.bf16 %v158_v5  ;;  %v114_v9 = vunpack.c.l.bf16 %v113_v6  ;;  %v144_v10 = vld [vmem:[#allocation1 + $0x2] sm:$0x3]  ;;  %v81_v11 = vld [vmem:[#allocation1 + $0xa] sm:$0x3]  ;;  %v97_v12 = vld [vmem:[#allocation1 + $0x8] sm:$0x3] }
   0xf   :  { %v145_v13 = vunpack.c.l.bf16 %v144_v10  ;;  %v82_v14 = vunpack.c.l.bf16 %v81_v11  ;;  %v98_v15 = vunpack.c.l.bf16 %v97_v12 }
  0x10   :  { %133 = vst [vmem:[#allocation0 + $0x28] sm:$0xf] %v130_v7  ;;  %161 = vst [vmem:[#allocation0 + $0x8] sm:$0xf] %v159_v8 }
  0x11   :  { %117 = vst [vmem:[#allocation0 + $0x20] sm:$0xf] %v114_v9  ;;  %148 = vst [vmem:[#allocation0 + $0x10] sm:$0xf] %v145_v13 }
  0x12   :  { %85 = vst [vmem:[#allocation0] sm:$0xf] %v82_v14  ;;  %101 = vst [vmem:[#allocation0 + $0x18] sm:$0xf] %v98_v15 }
  0x17   :  { %v174_v16 = vld [vmem:[#allocation0 + $0x28] sm:$0xff] }
  0x18   :  { %v162_v17 = vld [vmem:[#allocation0 + $0x8] sm:$0xff]  ;;  %175 = vperm.xlu1 %323, %v174_v16   ;;  %v180_v18 = vld [vmem:[#allocation0 + $0x20] sm:$0xff]  ;;  %v168_v19 = vld [vmem:[#allocation0 + $0x10] sm:$0xff] }
  0x19   :  { %163 = vperm.xlu0 %4, %v162_v17   ;;  %v192_v20 = vld [vmem:[#allocation0] sm:$0xff]  ;;  %v186_v21 = vld [vmem:[#allocation0 + $0x18] sm:$0xff] }
  0x1c   :  { %181 = vperm.xlu1 %323, %v180_v18  }
  0x1d   :  { %169 = vperm.xlu0 %4, %v168_v19  }
  0x20   :  { %193 = vperm.xlu1 %323, %v192_v20  }
  0x21   :  { %187 = vperm.xlu0 %4, %v186_v21  }
  0x93   :  { %v176_v22 = vpop.permute.xlu1 %175 }
  0x94   :  { %v164_v23 = vpop.permute.xlu0 %163  ;;  %177 = vst [vmem:[#allocation2 + $0x20] sm:$0xff] %v176_v22 }
  0x95   :  { %165 = vst [vmem:[#allocation2] sm:$0xff] %v164_v23 }
  0x97   :  { %v182_v24 = vpop.permute.xlu1 %181 }
  0x98   :  { %v170_v25 = vpop.permute.xlu0 %169  ;;  %183 = vst [vmem:[#allocation2 + $0x18] sm:$0xff] %v182_v24 }
  0x99   :  { %171 = vst [vmem:[#allocation2 + $0x8] sm:$0xff] %v170_v25 }
  0x9b   :  { %v214_v26 = vld [vmem:[#allocation2 + $0x20] sm:$0xf]  ;;  %v194_v28 = vpop.permute.xlu1 %193 }
  0x9c   :  { %v201_v27 = vld [vmem:[#allocation2] sm:$0xf]  ;;  %v188_v29 = vpop.permute.xlu0 %187  ;;  %v215_v31 = vpack.c.bf16 %v324_v30, %v214_v26  ;;  %195 = vst [vmem:[#allocation2 + $0x10] sm:$0xff] %v194_v28 }
  0x9d   :  { %v202_v32 = vpack.c.bf16 %v324_v30, %v201_v27  ;;  %189 = vst [vmem:[#allocation2 + $0x28] sm:$0xff] %v188_v29 }
  0x9e   :  { %220 = vst [vmem:[#allocation3 + $0x4] sm:$0x3] %v215_v31 }
  0x9f   :  { %205 = vst [vmem:[#allocation3] sm:$0x3] %v202_v32  ;;  %v222_v33 = vld [vmem:[#allocation2 + $0x18] sm:$0xf] }
  0xa0   :  { %v207_v34 = vld [vmem:[#allocation2 + $0x8] sm:$0xf]  ;;  %v223_v35 = vpack.c.bf16 %v324_v30, %v222_v33 }
  0xa1   :  { %v208_v36 = vpack.c.bf16 %v324_v30, %v207_v34 }
  0xa2   :  { %228 = vst [vmem:[#allocation3 + $0x6] sm:$0x3] %v223_v35 }
  0xa3   :  { %212 = vst [vmem:[#allocation3 + $0x2] sm:$0x3] %v208_v36  ;;  %v238_v37 = vld [vmem:[#allocation2 + $0x10] sm:$0xf] }
  0xa4   :  { %v230_v38 = vld [vmem:[#allocation2 + $0x28] sm:$0xf]  ;;  %v239_v39 = vpack.c.bf16 %v324_v30, %v238_v37 }
  0xa5   :  { %v231_v40 = vpack.c.bf16 %v324_v30, %v230_v38  ;;  %v265_v41 = vld [vmem:[#allocation3 + $0x4] sm:$0x3] }
  0xa6   :  { %v261_v42 = vld [vmem:[#allocation3] sm:$0x3]  ;;  %266 = vst [vmem:[%s360_s1 + $0x4] sm:$0x3] %v265_v41  ;;  %244 = vst [vmem:[#allocation3 + $0xa] sm:$0x3] %v239_v39 }
  0xa7   :  { %262 = vst [vmem:[%s360_s1] sm:$0x3] %v261_v42  ;;  %236 = vst [vmem:[#allocation3 + $0x8] sm:$0x3] %v231_v40 }
  0xa9   :  { %v267_v43 = vld [vmem:[#allocation3 + $0x6] sm:$0x3] }
  0xaa   :  { %v263_v44 = vld [vmem:[#allocation3 + $0x2] sm:$0x3]  ;;  %268 = vst [vmem:[%s360_s1 + $0x6] sm:$0x3] %v267_v43 }
  0xab   :  { %264 = vst [vmem:[%s360_s1 + $0x2] sm:$0x3] %v263_v44 }
  0xad   :  { %v271_v45 = vld [vmem:[#allocation3 + $0xa] sm:$0x3] }
  0xae   :  { %v269_v46 = vld [vmem:[#allocation3 + $0x8] sm:$0x3]  ;;  %272 = vst [vmem:[%s360_s1 + $0xa] sm:$0x3] %v271_v45 }
  0xaf   :  { %270 = vst [vmem:[%s360_s1 + $0x8] sm:$0x3] %v269_v46 }

// kernel: reverse.20
= control target key start
LH: loop header
LB: loop body
LE: loop exit
PB: predicated region body
PF: predicated region fallthrough
CT: control target
= control target key end

     0   :  { %v2_v0 = vlaneseq  ;;  %s705_s0 = inlined_call_operand.vmem [shape: bf16[2,3,6,6], index: 0, kind: input, shape index: {}]   ;;  %s706_s1 = inlined_call_operand.vmem [shape: bf16[2,3,6,6], index: 1, kind: output, shape index: {}]  }
   0x2   :  { %v3_v1 = vsub.s32 5, %v2_v0 }
   0x4   :  { %4 = vset.pattern.permute.xlu0 %v3_v1 }
   0x5   :  { %657 = vset.pattern.permute.xlu1 %v3_v1  ;;  %v19_v2 = vld [vmem:[%s705_s0] sm:$0xff]  ;;  %v21_v3 = vld [vmem:[%s705_s0 + $0x8] sm:$0xff]  ;;  %v654_v4 = vld [vmem:[%s705_s0 + $0x10] sm:$0x3] }
   0x6   :  { %20 = vst [vmem:[#allocation1] sm:$0xff] %v19_v2  ;;  %22 = vst [vmem:[#allocation1 + $0x8] sm:$0xff] %v21_v3  ;;  %v658_v3 = vmov 0.0  }
   0x7   :  { %34 = vst [vmem:[#allocation1 + $0x10] sm:$0x3] %v654_v4 }
   0xd   :  { %v320_v5 = vld [vmem:[#allocation1] sm:$0x1]  ;;  %v291_v6 = vld [vmem:[#allocation1 + $0x2] sm:$0x1]  ;;  %v306_v7 = vld [vmem:[#allocation1 + $0x1] sm:$0x1] }
   0xe   :  { %v321_v8 = vunpack.c.l.bf16 %v320_v5  ;;  %v292_v9 = vunpack.c.l.bf16 %v291_v6  ;;  %v307_v10 = vunpack.c.l.bf16 %v306_v7  ;;  %v275_v11 = vld [vmem:[#allocation1 + $0x3] sm:$0x1]  ;;  %v259_v12 = vld [vmem:[#allocation1 + $0x4] sm:$0x1]  ;;  %v243_v13 = vld [vmem:[#allocation1 + $0x5] sm:$0x1] }
   0xf   :  { %v276_v14 = vunpack.c.l.bf16 %v275_v11  ;;  %v260_v15 = vunpack.c.l.bf16 %v259_v12  ;;  %v244_v16 = vunpack.c.l.bf16 %v243_v13  ;;  %v227_v17 = vld [vmem:[#allocation1 + $0x6] sm:$0x1]  ;;  %v211_v18 = vld [vmem:[#allocation1 + $0x7] sm:$0x1]  ;;  %v195_v19 = vld [vmem:[#allocation1 + $0x8] sm:$0x1] }
  0x10   :  { %323 = vst [vmem:[#allocation0 + $0x28] sm:$0x3] %v321_v8  ;;  %295 = vst [vmem:[#allocation0 + $0x70] sm:$0x3] %v292_v9  ;;  %v228_v20 = vunpack.c.l.bf16 %v227_v17  ;;  %v212_v21 = vunpack.c.l.bf16 %v211_v18  ;;  %v196_v22 = vunpack.c.l.bf16 %v195_v19  ;;  %v179_v23 = vld [vmem:[#allocation1 + $0x9] sm:$0x1] }
  0x11   :  { %310 = vst [vmem:[#allocation0 + $0x20] sm:$0x3] %v307_v10  ;;  %v163_v24 = vld [vmem:[#allocation1 + $0xa] sm:$0x1]  ;;  %v147_v25 = vld [vmem:[#allocation1 + $0xb] sm:$0x1]  ;;  %v180_v26 = vunpack.c.l.bf16 %v179_v23 }
  0x12   :  { %279 = vst [vmem:[#allocation0 + $0x58] sm:$0x3] %v276_v14  ;;  %263 = vst [vmem:[#allocation0 + $0x40] sm:$0x3] %v260_v15  ;;  %v164_v27 = vunpack.c.l.bf16 %v163_v24  ;;  %v148_v28 = vunpack.c.l.bf16 %v147_v25  ;;  %v131_v29 = vld [vmem:[#allocation1 + $0xc] sm:$0x1] }
  0x13   :  { %247 = vst [vmem:[#allocation0 + $0x78] sm:$0x3] %v244_v16  ;;  %v115_v30 = vld [vmem:[#allocation1 + $0xd] sm:$0x1]  ;;  %v99_v31 = vld [vmem:[#allocation1 + $0xe] sm:$0x1]  ;;  %v132_v32 = vunpack.c.l.bf16 %v131_v29 }
  0x14   :  { %231 = vst [vmem:[#allocation0 + $0x60] sm:$0x3] %v228_v20  ;;  %215 = vst [vmem:[#allocation0 + $0x38] sm:$0x3] %v212_v21  ;;  %v116_v33 = vunpack.c.l.bf16 %v115_v30  ;;  %v100_v34 = vunpack.c.l.bf16 %v99_v31  ;;  %v83_v35 = vld [vmem:[#allocation1 + $0xf] sm:$0x1] }
  0x15   :  { %199 = vst [vmem:[#allocation0 + $0x48] sm:$0x3] %v196_v22  ;;  %v67_v36 = vld [vmem:[#allocation1 + $0x10] sm:$0x1]  ;;  %v51_v37 = vld [vmem:[#allocation1 + $0x11] sm:$0x1]  ;;  %v84_v38 = vunpack.c.l.bf16 %v83_v35 }
  0x16   :  { %183 = vst [vmem:[#allocation0] sm:$0x3] %v180_v26  ;;  %167 = vst [vmem:[#allocation0 + $0x8] sm:$0x3] %v164_v27  ;;  %v68_v39 = vunpack.c.l.bf16 %v67_v36  ;;  %v52_v40 = vunpack.c.l.bf16 %v51_v37 }
  0x17   :  { %151 = vst [vmem:[#allocation0 + $0x18] sm:$0x3] %v148_v28  ;;  %135 = vst [vmem:[#allocation0 + $0x80] sm:$0x3] %v132_v32  ;;  %v324_v41 = vld [vmem:[#allocation0 + $0x28] sm:$0xff]  ;;  %v336_v42 = vld [vmem:[#allocation0 + $0x70] sm:$0xff] }
  0x18   :  { %119 = vst [vmem:[#allocation0 + $0x68] sm:$0x3] %v116_v33  ;;  %103 = vst [vmem:[#allocation0 + $0x30] sm:$0x3] %v100_v34  ;;  %325 = vperm.xlu0 %4, %v324_v41   ;;  %337 = vperm.xlu1 %657, %v336_v42   ;;  %v330_v43 = vld [vmem:[#allocation0 + $0x20] sm:$0xff] }
  0x19   :  { %87 = vst [vmem:[#allocation0 + $0x10] sm:$0x3] %v84_v38  ;;  %71 = vst [vmem:[#allocation0 + $0x50] sm:$0x3] %v68_v39  ;;  %v342_v44 = vld [vmem:[#allocation0 + $0x58] sm:$0xff]  ;;  %v348_v45 = vld [vmem:[#allocation0 + $0x40] sm:$0xff] }
  0x1a   :  { %55 = vst [vmem:[#allocation0 + $0x88] sm:$0x3] %v52_v40  ;;  %v354_v46 = vld [vmem:[#allocation0 + $0x78] sm:$0xff] }
  0x1b   :  { %v360_v47 = vld [vmem:[#allocation0 + $0x60] sm:$0xff]  ;;  %v366_v48 = vld [vmem:[#allocation0 + $0x38] sm:$0xff] }
  0x1c   :  { %331 = vperm.xlu0 %4, %v330_v43   ;;  %343 = vperm.xlu1 %657, %v342_v44   ;;  %v372_v49 = vld [vmem:[#allocation0 + $0x48] sm:$0xff] }
  0x1d   :  { %v378_v50 = vld [vmem:[#allocation0] sm:$0xff]  ;;  %v384_v51 = vld [vmem:[#allocation0 + $0x8] sm:$0xff] }
  0x1e   :  { %v390_v52 = vld [vmem:[#allocation0 + $0x18] sm:$0xff]  ;;  %v396_v53 = vld [vmem:[#allocation0 + $0x80] sm:$0xff] }
  0x1f   :  { %v402_v54 = vld [vmem:[#allocation0 + $0x68] sm:$0xff]  ;;  %v408_v55 = vld [vmem:[#allocation0 + $0x30] sm:$0xff] }
  0x20   :  { %349 = vperm.xlu0 %4, %v348_v45   ;;  %355 = vperm.xlu1 %657, %v354_v46   ;;  %v414_v56 = vld [vmem:[#allocation0 + $0x10] sm:$0xff] }
  0x21   :  { %v420_v57 = vld [vmem:[#allocation0 + $0x50] sm:$0xff]  ;;  %v426_v58 = vld [vmem:[#allocation0 + $0x88] sm:$0xff] }
  0x24   :  { %361 = vperm.xlu0 %4, %v360_v47   ;;  %367 = vperm.xlu1 %657, %v366_v48  }
  0x28   :  { %373 = vperm.xlu0 %4, %v372_v49   ;;  %379 = vperm.xlu1 %657, %v378_v50  }
  0x2c   :  { %385 = vperm.xlu0 %4, %v384_v51   ;;  %391 = vperm.xlu1 %657, %v390_v52  }
  0x30   :  { %397 = vperm.xlu0 %4, %v396_v53   ;;  %403 = vperm.xlu1 %657, %v402_v54  }
  0x34   :  { %409 = vperm.xlu0 %4, %v408_v55   ;;  %415 = vperm.xlu1 %657, %v414_v56  }
  0x38   :  { %421 = vperm.xlu0 %4, %v420_v57   ;;  %427 = vperm.xlu1 %657, %v426_v58  }
  0x93   :  { %v326_v59 = vpop.permute.xlu0 %325  ;;  %v338_v60 = vpop.permute.xlu1 %337 }
  0x94   :  { %327 = vst [vmem:[#allocation2 + $0x88] sm:$0xff] %v326_v59  ;;  %339 = vst [vmem:[#allocation2 + $0x10] sm:$0xff] %v338_v60 }
  0x97   :  { %v332_v61 = vpop.permute.xlu0 %331  ;;  %v344_v62 = vpop.permute.xlu1 %343 }
  0x98   :  { %333 = vst [vmem:[#allocation2 + $0x48] sm:$0xff] %v332_v61  ;;  %345 = vst [vmem:[#allocation2 + $0x20] sm:$0xff] %v344_v62 }
  0x9b   :  { %v435_v63 = vld [vmem:[#allocation2 + $0x88] sm:$0x3]  ;;  %v448_v0 = vld [vmem:[#allocation2 + $0x10] sm:$0x3]  ;;  %v350_v1 = vpop.permute.xlu0 %349  ;;  %v356_v2 = vpop.permute.xlu1 %355 }
  0x9c   :  { %v436_v4 = vpack.c.bf16 %v658_v3, %v435_v63  ;;  %v449_v5 = vpack.c.bf16 %v658_v3, %v448_v0  ;;  %351 = vst [vmem:[#allocation2 + $0x50] sm:$0xff] %v350_v1  ;;  %357 = vst [vmem:[#allocation2 + $0x18] sm:$0xff] %v356_v2 }
  0x9e   :  { %439 = vst [vmem:[#allocation3] sm:$0x1] %v436_v4  ;;  %454 = vst [vmem:[#allocation3 + $0x2] sm:$0x1] %v449_v5 }
  0x9f   :  { %v441_v6 = vld [vmem:[#allocation2 + $0x48] sm:$0x3]  ;;  %v456_v7 = vld [vmem:[#allocation2 + $0x20] sm:$0x3]  ;;  %v362_v8 = vpop.permute.xlu0 %361  ;;  %v368_v9 = vpop.permute.xlu1 %367 }
  0xa0   :  { %v442_v10 = vpack.c.bf16 %v658_v3, %v441_v6  ;;  %v457_v11 = vpack.c.bf16 %v658_v3, %v456_v7  ;;  %363 = vst [vmem:[#allocation2 + $0x60] sm:$0xff] %v362_v8  ;;  %369 = vst [vmem:[#allocation2 + $0x78] sm:$0xff] %v368_v9 }
  0xa2   :  { %446 = vst [vmem:[#allocation3 + $0x1] sm:$0x1] %v442_v10  ;;  %462 = vst [vmem:[#allocation3 + $0x3] sm:$0x1] %v457_v11 }
  0xa3   :  { %v464_v12 = vld [vmem:[#allocation2 + $0x50] sm:$0x3]  ;;  %v472_v13 = vld [vmem:[#allocation2 + $0x18] sm:$0x3]  ;;  %v374_v14 = vpop.permute.xlu0 %373  ;;  %v380_v15 = vpop.permute.xlu1 %379 }
  0xa4   :  { %v465_v16 = vpack.c.bf16 %v658_v3, %v464_v12  ;;  %v473_v17 = vpack.c.bf16 %v658_v3, %v472_v13  ;;  %375 = vst [vmem:[#allocation2 + $0x28] sm:$0xff] %v374_v14  ;;  %381 = vst [vmem:[#allocation2 + $0x8] sm:$0xff] %v380_v15 }
  0xa6   :  { %470 = vst [vmem:[#allocation3 + $0x4] sm:$0x1] %v465_v16  ;;  %478 = vst [vmem:[#allocation3 + $0x5] sm:$0x1] %v473_v17 }
  0xa7   :  { %v480_v18 = vld [vmem:[#allocation2 + $0x60] sm:$0x3]  ;;  %v488_v19 = vld [vmem:[#allocation2 + $0x78] sm:$0x3]  ;;  %v386_v20 = vpop.permute.xlu0 %385  ;;  %v392_v21 = vpop.permute.xlu1 %391 }
  0xa8   :  { %v481_v22 = vpack.c.bf16 %v658_v3, %v480_v18  ;;  %v489_v23 = vpack.c.bf16 %v658_v3, %v488_v19  ;;  %387 = vst [vmem:[#allocation2 + $0x30] sm:$0xff] %v386_v20  ;;  %393 = vst [vmem:[#allocation2 + $0x40] sm:$0xff] %v392_v21 }
  0xaa   :  { %486 = vst [vmem:[#allocation3 + $0x6] sm:$0x1] %v481_v22  ;;  %494 = vst [vmem:[#allocation3 + $0x7] sm:$0x1] %v489_v23 }
  0xab   :  { %v496_v24 = vld [vmem:[#allocation2 + $0x28] sm:$0x3]  ;;  %v398_v26 = vpop.permute.xlu0 %397  ;;  %v404_v27 = vpop.permute.xlu1 %403 }
  0xac   :  { %v504_v25 = vld [vmem:[#allocation2 + $0x8] sm:$0x3]  ;;  %v497_v28 = vpack.c.bf16 %v658_v3, %v496_v24  ;;  %399 = vst [vmem:[#allocation2 + $0x58] sm:$0xff] %v398_v26  ;;  %405 = vst [vmem:[#allocation2 + $0x70] sm:$0xff] %v404_v27 }
  0xad   :  { %v505_v29 = vpack.c.bf16 %v658_v3, %v504_v25 }
  0xae   :  { %502 = vst [vmem:[#allocation3 + $0x8] sm:$0x1] %v497_v28 }
  0xaf   :  { %510 = vst [vmem:[#allocation3 + $0x9] sm:$0x1] %v505_v29  ;;  %v512_v30 = vld [vmem:[#allocation2 + $0x30] sm:$0x3]  ;;  %v520_v31 = vld [vmem:[#allocation2 + $0x40] sm:$0x3]  ;;  %v410_v32 = vpop.permute.xlu0 %409  ;;  %v416_v33 = vpop.permute.xlu1 %415 }
  0xb0   :  { %v513_v34 = vpack.c.bf16 %v658_v3, %v512_v30  ;;  %v521_v35 = vpack.c.bf16 %v658_v3, %v520_v31  ;;  %411 = vst [vmem:[#allocation2 + $0x38] sm:$0xff] %v410_v32  ;;  %417 = vst [vmem:[#allocation2 + $0x68] sm:$0xff] %v416_v33 }
  0xb1   :  { %v589_v36 = vld [vmem:[#allocation3] sm:$0xff] }
  0xb2   :  { %590 = vst [vmem:[%s706_s1] sm:$0xff] %v589_v36  ;;  %518 = vst [vmem:[#allocation3 + $0xa] sm:$0x1] %v513_v34 }
  0xb3   :  { %526 = vst [vmem:[#allocation3 + $0xb] sm:$0x1] %v521_v35  ;;  %v528_v37 = vld [vmem:[#allocation2 + $0x58] sm:$0x3]  ;;  %v536_v38 = vld [vmem:[#allocation2 + $0x70] sm:$0x3]  ;;  %v422_v39 = vpop.permute.xlu0 %421  ;;  %v428_v40 = vpop.permute.xlu1 %427 }
  0xb4   :  { %v529_v41 = vpack.c.bf16 %v658_v3, %v528_v37  ;;  %v537_v42 = vpack.c.bf16 %v658_v3, %v536_v38  ;;  %423 = vst [vmem:[#allocation2 + $0x80] sm:$0xff] %v422_v39  ;;  %429 = vst [vmem:[#allocation2] sm:$0xff] %v428_v40 }
  0xb6   :  { %534 = vst [vmem:[#allocation3 + $0xc] sm:$0x1] %v529_v41  ;;  %542 = vst [vmem:[#allocation3 + $0xd] sm:$0x1] %v537_v42 }
  0xb7   :  { %v544_v43 = vld [vmem:[#allocation2 + $0x38] sm:$0x3]  ;;  %v552_v44 = vld [vmem:[#allocation2 + $0x68] sm:$0x3] }
  0xb8   :  { %v545_v45 = vpack.c.bf16 %v658_v3, %v544_v43  ;;  %v553_v46 = vpack.c.bf16 %v658_v3, %v552_v44 }
  0xba   :  { %550 = vst [vmem:[#allocation3 + $0xe] sm:$0x1] %v545_v45  ;;  %558 = vst [vmem:[#allocation3 + $0xf] sm:$0x1] %v553_v46 }
  0xbb   :  { %v560_v47 = vld [vmem:[#allocation2 + $0x80] sm:$0x3] }
  0xbc   :  { %v568_v48 = vld [vmem:[#allocation2] sm:$0x3]  ;;  %v561_v49 = vpack.c.bf16 %v658_v3, %v560_v47 }
  0xbd   :  { %v569_v50 = vpack.c.bf16 %v658_v3, %v568_v48 }
  0xbe   :  { %566 = vst [vmem:[#allocation3 + $0x10] sm:$0x1] %v561_v49 }
  0xbf   :  { %574 = vst [vmem:[#allocation3 + $0x11] sm:$0x1] %v569_v50 }
  0xc1   :  { %v591_v51 = vld [vmem:[#allocation3 + $0x8] sm:$0xff] }
  0xc2   :  { %592 = vst [vmem:[%s706_s1 + $0x8] sm:$0xff] %v591_v51 }
  0xc6   :  { %v603_v52 = vld [vmem:[#allocation3 + $0x10] sm:$0x3] }
  0xc7   :  { %655 = vst [vmem:[%s706_s1 + $0x10] sm:$0x3] %v603_v52 }

// kernel: shell_multiscale_forward.1
= control target key start
LH: loop header
LB: loop body
LE: loop exit
PB: predicated region body
PF: predicated region fallthrough
CT: control target
= control target key end

     0   :  { %s1415_s12 = smov 0   ;;  %s1529_s0 = inlined_call_operand.vmem [shape: bf16[2048,40], index: 0, kind: input, shape index: {}]   ;;  %s1530_s1 = inlined_call_operand.vmem [shape: bf16[40,40], index: 1, kind: input, shape index: {}]   ;;  %s1531_s2 = inlined_call_operand.vmem [shape: bf16[40,128], index: 2, kind: input, shape index: {}]   ;;  %s1532_s3 = inlined_call_operand.vmem [shape: bf16[2048,128], index: 3, kind: output, shape index: {}]  }
   0x1 LB: > { %s1017_s13 = sadd.s32 4294967295, %s1393_s12   ;;  %p1021_p0 = scmp.ge.s32.totalorder %s1393_s12, 1  ;;  %s1393_s12 = sphi %s1415_s12, %s13_s12  }
   0x2   : > { %p138_p1 = scmp.lt.s32.totalorder %s1393_s12, 9 }
   0x4   : > { %p139_p2 = pnand %p1021_p0, %p138_p1 }
   0x5   : > { %s1022_s18 = sshll.u32 (!%p139_p2), %s1017_s13, 5 }
   0x6   : > { %142 = sbr.rel (%p139_p2) target bundleno = 486 (0x1e6), region = 32  ;;  %p163_p3 = scmp.lt.s32.totalorder (!%p139_p2), %s1022_s18, 255 }
   0xb   : > { %v1365_v0 = vld [vmem:[%s1530_s1 + $0x10] ss:$0 sps:$4 sm:$0xff]   ;;  %vm356_vm0 = vcmask 1043456   ;;  %v1366_v1 = vld [vmem:[%s1530_s1 + $0x8] sm:$0xff]   ;;  %v1367_v3 = vld [vmem:[%s1530_s1] sm:$0xff]   ;;  %s1534_s18 = smov (!%p163_p3, %s1022_s18), 255 }
   0xc   : > { %1355 = vmatprep.subr.msk.bf16.mxu0 %vm356_vm0, %v1365_v0  ;;  %v358_v2 = vsel %vm356_vm0, %v1365_v0, 0  ;;  %s1023_s21 = sshll.u32 %s1534_s18, 2  ;;  %vm307_vm1 = vcmask 326656   ;;  %v1384_v20 = vld [vmem:[%s1531_s2 + $0x10] ss:$0 sps:$4 sm:$0xff]   ;;  %v1385_v22 = vld [vmem:[%s1531_s2 + $0x8] sm:$0xff]  }
   0xd   : > { %1280 = vmatpush3.bf16.msra.mxu0 %v358_v2  ;;  %s1442_s24 = scalar_lea.vmem %s1529_s0, %s1023_s21  ;;  %1356 = vmatprep.subr.msk.bf16.mxu1 %vm356_vm0, %v1384_v20  ;;  %v638_v21 = vsel %vm356_vm0, %v1384_v20, 0  ;;  %v1386_v23 = vld [vmem:[%s1531_s2] sm:$0xff]   ;;  %s1508_s6 = scalar_lea.vmem %s1532_s3, %s1023_s21 }
   0xe   : > { %1281 = vmatprep.subr.bf16.mxu0 %v1366_v1  ;;  %v1368_v4 = vld [vmem:[%s1442_s24] sm:$0xff]   ;;  %v1369_v5 = vld [vmem:[%s1442_s24 + $0x8] sm:$0xff]   ;;  %v1370_v6 = vld [vmem:[%s1442_s24 + $0x10] sm:$0xff]   ;;  %1318 = vmatpush3.bf16.msra.mxu1 %v638_v21 }
   0xf   : > { %1285 = vmatprep.mubr.msk.bf16.mxu0 %vm307_vm1, %v1368_v4  ;;  %v1371_v7 = vld [vmem:[%s1442_s24 + $0x18] sm:$0xff]   ;;  %v1372_v8 = vld [vmem:[%s1442_s24 + $0x20] sm:$0xff]   ;;  %v1373_v9 = vld [vmem:[%s1442_s24 + $0x28] sm:$0xff]   ;;  %1319 = vmatprep.subr.bf16.mxu1 %v1385_v22 }
  0x10   : > { %v1374_v10 = vld [vmem:[%s1442_s24 + $0x30] sm:$0xff]   ;;  %v1375_v11 = vld [vmem:[%s1442_s24 + $0x38] sm:$0xff]   ;;  %v1376_v12 = vld [vmem:[%s1442_s24 + $0x40] sm:$0xff]  }
  0x11   : > { %1282 = vmatpush3.bf16.msra.mxu0 %v1366_v1  ;;  %v1377_v13 = vld [vmem:[%s1442_s24 + $0x48] sm:$0xff]   ;;  %v1378_v14 = vld [vmem:[%s1442_s24 + $0x50] sm:$0xff]   ;;  %v1379_v15 = vld [vmem:[%s1442_s24 + $0x58] sm:$0xff]  }
  0x12   : > { %1283 = vmatprep.subr.bf16.mxu0 %v1367_v3  ;;  %v1380_v16 = vld [vmem:[%s1442_s24 + $0x60] sm:$0xff]   ;;  %v1381_v17 = vld [vmem:[%s1442_s24 + $0x68] sm:$0xff]   ;;  %v1382_v18 = vld [vmem:[%s1442_s24 + $0x70] sm:$0xff]   ;;  %1320 = vmatpush3.bf16.msra.mxu1 %v1385_v22 }
  0x13   : > { %v1383_v19 = vld [vmem:[%s1442_s24 + $0x78] sm:$0xff]   ;;  %1321 = vmatprep.subr.bf16.mxu1 %v1386_v23 }
  0x15   : > { %1284 = vmatpush3.bf16.msra.mxu0 %v1367_v3 }
  0x16   : > { %1322 = vmatpush3.bf16.msra.mxu1 %v1386_v23 }
  0x18   : > { %1286 = vmatmul.mubr.msk.bf16.vlgmr.msra.gmra.mxu0 %vm307_vm1, %v1369_v5 }
  0x19   : > { %1289 = vmatprep.mubr.msk.bf16.mxu0 %vm307_vm1, %v1370_v6 }
  0x20   : > { %1290 = vmatmul.mubr.msk.bf16.gmra.mxu0 %vm307_vm1, %v1371_v7 }
  0x21   : > { %1293 = vmatprep.mubr.msk.bf16.mxu0 %vm307_vm1, %v1372_v8 }
  0x28   : > { %1294 = vmatmul.mubr.msk.bf16.gmra.mxu0 %vm307_vm1, %v1373_v9 }
  0x29   : > { %1297 = vmatprep.mubr.msk.bf16.mxu0 %vm307_vm1, %v1374_v10 }
  0x30   : > { %1298 = vmatmul.mubr.msk.bf16.gmra.mxu0 %vm307_vm1, %v1375_v11 }
  0x31   : > { %1301 = vmatprep.mubr.msk.bf16.mxu0 %vm307_vm1, %v1376_v12 }
  0x38   : > { %1302 = vmatmul.mubr.msk.bf16.gmra.mxu0 %vm307_vm1, %v1377_v13 }
  0x39   : > { %1305 = vmatprep.mubr.msk.bf16.mxu0 %vm307_vm1, %v1378_v14 }
  0x40   : > { %1306 = vmatmul.mubr.msk.bf16.gmra.mxu0 %vm307_vm1, %v1379_v15 }
  0x41   : > { %1309 = vmatprep.mubr.msk.bf16.mxu0 %vm307_vm1, %v1380_v16 }
  0x48   : > { %1310 = vmatmul.mubr.msk.bf16.gmra.mxu0 %vm307_vm1, %v1381_v17 }
  0x49   : > { %1313 = vmatprep.mubr.msk.bf16.mxu0 %vm307_vm1, %v1382_v18 }
  0x50   : > { %1314 = vmatmul.mubr.msk.bf16.gmra.mxu0 %vm307_vm1, %v1383_v19 }
  0xd8   : > { %v1287_v24 = vpop.f32.mrf.mxu0 }
  0xd9   : > { %v523_v31 = vmax.f32 %v1287_v24, 0.0 }
  0xda   : > { %v394_v25 = vpop.f32.mrf.mxu0 }
  0xdb   : > { %v521_v29 = vmax.f32 %v394_v25, 0.0 }
  0xdc   : > { %v1288_v26 = vpop.f32.mrf.mxu0 }
  0xdd   : > { %v524_v27 = vmax.f32 %v1288_v26, 0.0 }
  0xde   : > { %v397_v28 = vpop.f32.mrf.mxu0 }
  0xdf   : > { %v522_v30 = vmax.f32 %v397_v28, 0.0  ;;  %v554_v34 = vpack.c.bf16 %v524_v27, %v523_v31 }
  0xe0   : > { %v1291_v32 = vpop.f32.mrf.mxu0 }
  0xe1   : > { %v553_v33 = vpack.c.bf16 %v522_v30, %v521_v29  ;;  %v527_v41 = vmax.f32 %v1291_v32, 0.0 }
  0xe2   : > { %v410_v35 = vpop.f32.mrf.mxu0 }
  0xe3   : > { %1323 = vmatprep.mubr.msk.bf16.mxu1 %vm307_vm1, %v553_v33  ;;  %v525_v39 = vmax.f32 %v410_v35, 0.0 }
  0xe4   : > { %v1292_v36 = vpop.f32.mrf.mxu0  ;;  %1324 = vmatmul.mubr.msk.bf16.vlgmr.msra.gmra.mxu1 %vm307_vm1, %v554_v34 }
  0xe5   : > { %v528_v37 = vmax.f32 %v1292_v36, 0.0 }
  0xe6   : > { %v413_v38 = vpop.f32.mrf.mxu0 }
  0xe7   : > { %v526_v40 = vmax.f32 %v413_v38, 0.0  ;;  %v556_v44 = vpack.c.bf16 %v528_v37, %v527_v41 }
  0xe8   : > { %v1295_v42 = vpop.f32.mrf.mxu0 }
  0xe9   : > { %v555_v43 = vpack.c.bf16 %v526_v40, %v525_v39  ;;  %v531_v51 = vmax.f32 %v1295_v42, 0.0 }
  0xea   : > { %v426_v45 = vpop.f32.mrf.mxu0 }
  0xeb   : > { %1327 = vmatprep.mubr.msk.bf16.mxu1 %vm307_vm1, %v555_v43  ;;  %v529_v49 = vmax.f32 %v426_v45, 0.0 }
  0xec   : > { %v1296_v46 = vpop.f32.mrf.mxu0  ;;  %1328 = vmatmul.mubr.msk.bf16.gmra.mxu1 %vm307_vm1, %v556_v44 }
  0xed   : > { %v532_v47 = vmax.f32 %v1296_v46, 0.0 }
  0xee   : > { %v429_v48 = vpop.f32.mrf.mxu0 }
  0xef   : > { %v530_v50 = vmax.f32 %v429_v48, 0.0  ;;  %v558_v54 = vpack.c.bf16 %v532_v47, %v531_v51 }
  0xf0   : > { %v1299_v52 = vpop.f32.mrf.mxu0 }
  0xf1   : > { %v557_v53 = vpack.c.bf16 %v530_v50, %v529_v49  ;;  %v535_v61 = vmax.f32 %v1299_v52, 0.0 }
  0xf2   : > { %v442_v55 = vpop.f32.mrf.mxu0 }
  0xf3   : > { %1331 = vmatprep.mubr.msk.bf16.mxu1 %vm307_vm1, %v557_v53  ;;  %v533_v59 = vmax.f32 %v442_v55, 0.0 }
  0xf4   : > { %v1300_v56 = vpop.f32.mrf.mxu0  ;;  %1332 = vmatmul.mubr.msk.bf16.gmra.mxu1 %vm307_vm1, %v558_v54 }
  0xf5   : > { %v536_v57 = vmax.f32 %v1300_v56, 0.0 }
  0xf6   : > { %v445_v58 = vpop.f32.mrf.mxu0 }
  0xf7   : > { %v534_v60 = vmax.f32 %v445_v58, 0.0  ;;  %v560_v0 = vpack.c.bf16 %v536_v57, %v535_v61 }
  0xf8   : > { %v1303_v62 = vpop.f32.mrf.mxu0 }
  0xf9   : > { %v559_v63 = vpack.c.bf16 %v534_v60, %v533_v59  ;;  %v539_v7 = vmax.f32 %v1303_v62, 0.0 }
  0xfa   : > { %v458_v1 = vpop.f32.mrf.mxu0 }
  0xfb   : > { %1335 = vmatprep.mubr.msk.bf16.mxu1 %vm307_vm1, %v559_v63  ;;  %v537_v5 = vmax.f32 %v458_v1, 0.0 }
  0xfc   : > { %v1304_v2 = vpop.f32.mrf.mxu0  ;;  %1336 = vmatmul.mubr.msk.bf16.gmra.mxu1 %vm307_vm1, %v560_v0 }
  0xfd   : > { %v540_v3 = vmax.f32 %v1304_v2, 0.0 }
  0xfe   : > { %v461_v4 = vpop.f32.mrf.mxu0 }
  0xff   : > { %v538_v6 = vmax.f32 %v461_v4, 0.0  ;;  %v562_v10 = vpack.c.bf16 %v540_v3, %v539_v7 }
 0x100   : > { %v1307_v8 = vpop.f32.mrf.mxu0 }
 0x101   : > { %v561_v9 = vpack.c.bf16 %v538_v6, %v537_v5  ;;  %v543_v17 = vmax.f32 %v1307_v8, 0.0 }
 0x102   : > { %v474_v11 = vpop.f32.mrf.mxu0 }
 0x103   : > { %1339 = vmatprep.mubr.msk.bf16.mxu1 %vm307_vm1, %v561_v9  ;;  %v541_v15 = vmax.f32 %v474_v11, 0.0 }
 0x104   : > { %v1308_v12 = vpop.f32.mrf.mxu0  ;;  %1340 = vmatmul.mubr.msk.bf16.gmra.mxu1 %vm307_vm1, %v562_v10 }
 0x105   : > { %v544_v13 = vmax.f32 %v1308_v12, 0.0 }
 0x106   : > { %v477_v14 = vpop.f32.mrf.mxu0 }
 0x107   : > { %v542_v16 = vmax.f32 %v477_v14, 0.0  ;;  %v564_v20 = vpack.c.bf16 %v544_v13, %v543_v17 }
 0x108   : > { %v1311_v18 = vpop.f32.mrf.mxu0 }
 0x109   : > { %v563_v19 = vpack.c.bf16 %v542_v16, %v541_v15  ;;  %v547_v27 = vmax.f32 %v1311_v18, 0.0 }
 0x10a   : > { %v490_v21 = vpop.f32.mrf.mxu0 }
 0x10b   : > { %1343 = vmatprep.mubr.msk.bf16.mxu1 %vm307_vm1, %v563_v19  ;;  %v545_v25 = vmax.f32 %v490_v21, 0.0 }
 0x10c   : > { %v1312_v22 = vpop.f32.mrf.mxu0  ;;  %1344 = vmatmul.mubr.msk.bf16.gmra.mxu1 %vm307_vm1, %v564_v20 }
 0x10d   : > { %v548_v23 = vmax.f32 %v1312_v22, 0.0 }
 0x10e   : > { %v493_v24 = vpop.f32.mrf.mxu0 }
 0x10f   : > { %v546_v26 = vmax.f32 %v493_v24, 0.0  ;;  %v566_v30 = vpack.c.bf16 %v548_v23, %v547_v27 }
 0x110   : > { %v1315_v28 = vpop.f32.mrf.mxu0 }
 0x111   : > { %v565_v29 = vpack.c.bf16 %v546_v26, %v545_v25  ;;  %v551_v37 = vmax.f32 %v1315_v28, 0.0 }
 0x112   : > { %v506_v31 = vpop.f32.mrf.mxu0 }
 0x113   : > { %1347 = vmatprep.mubr.msk.bf16.mxu1 %vm307_vm1, %v565_v29  ;;  %v549_v35 = vmax.f32 %v506_v31, 0.0 }
 0x114   : > { %v1316_v32 = vpop.f32.mrf.mxu0  ;;  %1348 = vmatmul.mubr.msk.bf16.gmra.mxu1 %vm307_vm1, %v566_v30 }
 0x115   : > { %v552_v33 = vmax.f32 %v1316_v32, 0.0 }
 0x116   : > { %v509_v34 = vpop.f32.mrf.mxu0 }
 0x117   : > { %v550_v36 = vmax.f32 %v509_v34, 0.0  ;;  %v568_v39 = vpack.c.bf16 %v552_v33, %v551_v37 }
 0x119   : > { %v567_v38 = vpack.c.bf16 %v550_v36, %v549_v35 }
 0x11b   : > { %1351 = vmatprep.mubr.msk.bf16.mxu1 %vm307_vm1, %v567_v38 }
 0x11c   : > { %1352 = vmatmul.mubr.msk.bf16.gmra.mxu1 %vm307_vm1, %v568_v39 }
 0x1a4   : > { %v1325_v40 = vpop.f32.mrf.mxu1 }
 0x1a6   : > { %v674_v41 = vpop.f32.mrf.mxu1 }
 0x1a8   : > { %v1326_v42 = vpop.f32.mrf.mxu1 }
 0x1a9   : > { %v1154_v43 = vpack.c.bf16 %v1326_v42, %v1325_v40 }
 0x1aa   : > { %v677_v44 = vpop.f32.mrf.mxu1 }
 0x1ab   : > { %1226 = vst [vmem:[%s1508_s6 + $0x8] sm:$0xff] %v1154_v43   ;;  %v1149_v45 = vpack.c.bf16 %v677_v44, %v674_v41 }
 0x1ac   : > { %v1329_v46 = vpop.f32.mrf.mxu1 }
 0x1ad   : > { %1150 = vst [vmem:[%s1508_s6] sm:$0xff] %v1149_v45  }
 0x1ae   : > { %v690_v47 = vpop.f32.mrf.mxu1 }
 0x1b0   : > { %v1330_v48 = vpop.f32.mrf.mxu1 }
 0x1b1   : > { %v1164_v49 = vpack.c.bf16 %v1330_v48, %v1329_v46 }
 0x1b2   : > { %v693_v50 = vpop.f32.mrf.mxu1 }
 0x1b3   : > { %1228 = vst [vmem:[%s1508_s6 + $0x18] sm:$0xff] %v1164_v49   ;;  %v1159_v51 = vpack.c.bf16 %v693_v50, %v690_v47 }
 0x1b4   : > { %v1333_v52 = vpop.f32.mrf.mxu1 }
 0x1b5   : > { %1227 = vst [vmem:[%s1508_s6 + $0x10] sm:$0xff] %v1159_v51  }
 0x1b6   : > { %v706_v53 = vpop.f32.mrf.mxu1 }
 0x1b8   : > { %v1334_v54 = vpop.f32.mrf.mxu1 }
 0x1b9   : > { %v1174_v55 = vpack.c.bf16 %v1334_v54, %v1333_v52 }
 0x1ba   : > { %v709_v56 = vpop.f32.mrf.mxu1 }
 0x1bb   : > { %1230 = vst [vmem:[%s1508_s6 + $0x28] sm:$0xff] %v1174_v55   ;;  %v1169_v57 = vpack.c.bf16 %v709_v56, %v706_v53 }
 0x1bc   : > { %v1337_v58 = vpop.f32.mrf.mxu1 }
 0x1bd   : > { %1229 = vst [vmem:[%s1508_s6 + $0x20] sm:$0xff] %v1169_v57  }
 0x1be   : > { %v722_v59 = vpop.f32.mrf.mxu1 }
 0x1c0   : > { %v1338_v60 = vpop.f32.mrf.mxu1 }
 0x1c1   : > { %v1184_v61 = vpack.c.bf16 %v1338_v60, %v1337_v58 }
 0x1c2   : > { %v725_v62 = vpop.f32.mrf.mxu1 }
 0x1c3   : > { %1232 = vst [vmem:[%s1508_s6 + $0x38] sm:$0xff] %v1184_v61   ;;  %v1179_v63 = vpack.c.bf16 %v725_v62, %v722_v59 }
 0x1c4   : > { %v1341_v0 = vpop.f32.mrf.mxu1 }
 0x1c5   : > { %1231 = vst [vmem:[%s1508_s6 + $0x30] sm:$0xff] %v1179_v63  }
 0x1c6   : > { %v738_v1 = vpop.f32.mrf.mxu1 }
 0x1c8   : > { %v1342_v2 = vpop.f32.mrf.mxu1 }
 0x1c9   : > { %v1194_v3 = vpack.c.bf16 %v1342_v2, %v1341_v0 }
 0x1ca   : > { %v741_v4 = vpop.f32.mrf.mxu1 }
 0x1cb   : > { %1234 = vst [vmem:[%s1508_s6 + $0x48] sm:$0xff] %v1194_v3   ;;  %v1189_v5 = vpack.c.bf16 %v741_v4, %v738_v1 }
 0x1cc   : > { %v1345_v6 = vpop.f32.mrf.mxu1 }
 0x1cd   : > { %1233 = vst [vmem:[%s1508_s6 + $0x40] sm:$0xff] %v1189_v5  }
 0x1ce   : > { %v754_v7 = vpop.f32.mrf.mxu1 }
 0x1d0   : > { %v1346_v8 = vpop.f32.mrf.mxu1 }
 0x1d1   : > { %v1204_v9 = vpack.c.bf16 %v1346_v8, %v1345_v6 }
 0x1d2   : > { %v757_v10 = vpop.f32.mrf.mxu1 }
 0x1d3   : > { %1236 = vst [vmem:[%s1508_s6 + $0x58] sm:$0xff] %v1204_v9   ;;  %v1199_v11 = vpack.c.bf16 %v757_v10, %v754_v7 }
 0x1d4   : > { %v1349_v12 = vpop.f32.mrf.mxu1 }
 0x1d5   : > { %1235 = vst [vmem:[%s1508_s6 + $0x50] sm:$0xff] %v1199_v11  }
 0x1d6   : > { %v770_v13 = vpop.f32.mrf.mxu1 }
 0x1d8   : > { %v1350_v14 = vpop.f32.mrf.mxu1 }
 0x1d9   : > { %v1214_v15 = vpack.c.bf16 %v1350_v14, %v1349_v12 }
 0x1da   : > { %v773_v16 = vpop.f32.mrf.mxu1 }
 0x1db   : > { %1238 = vst [vmem:[%s1508_s6 + $0x68] sm:$0xff] %v1214_v15   ;;  %v1209_v17 = vpack.c.bf16 %v773_v16, %v770_v13 }
 0x1dc   : > { %v1353_v18 = vpop.f32.mrf.mxu1 }
 0x1dd   : > { %1237 = vst [vmem:[%s1508_s6 + $0x60] sm:$0xff] %v1209_v17  }
 0x1de   : > { %v786_v19 = vpop.f32.mrf.mxu1 }
 0x1e0   : > { %v1354_v20 = vpop.f32.mrf.mxu1 }
 0x1e1   : > { %v1224_v21 = vpack.c.bf16 %v1354_v20, %v1353_v18 }
 0x1e2   : > { %v789_v22 = vpop.f32.mrf.mxu1 }
 0x1e3   : > { %1240 = vst [vmem:[%s1508_s6 + $0x78] sm:$0xff] %v1224_v21   ;;  %v1219_v23 = vpack.c.bf16 %v789_v22, %v786_v19 }
 0x1e5   : > { %1239 = vst [vmem:[%s1508_s6 + $0x70] sm:$0xff] %v1219_v23  }
 0x1e6 PF: > { %s13_s12 = sadd.s32 1, %s1393_s12  }
 0x1e7   : > { %p10_p4 = scmp.ge.s32.totalorder %s13_s12, 10  }
 0x1e9   :  { %12 = sbr.rel (!%p10_p4) target bundleno = 1 (0x1), region = 62 }

// kernel: reverse.14
= control target key start
LH: loop header
LB: loop body
LE: loop exit
PB: predicated region body
PF: predicated region fallthrough
CT: control target
= control target key end

     0   :  { %v2_v0 = vlaneseq  ;;  %s393_s0 = inlined_call_operand.vmem [shape: bf16[2,3,8,8], index: 0, kind: input, shape index: {}]   ;;  %s394_s1 = inlined_call_operand.vmem [shape: bf16[2,3,8,8], index: 1, kind: output, shape index: {}]  }
   0x2   :  { %v3_v1 = vsub.s32 7, %v2_v0 }
   0x4   :  { %4 = vset.pattern.permute.xlu0 %v3_v1 }
   0x5   :  { %v21_v2 = vld [vmem:[%s393_s0] sm:$0xff]   ;;  %359 = vset.pattern.permute.xlu1 %v3_v1  ;;  %v29_v3 = vld [vmem:[%s393_s0 + $0x10] sm:$0xff]   ;;  %v25_v4 = vld [vmem:[%s393_s0 + $0x8] sm:$0xff]  }
   0x6   :  { %22 = vst [vmem:[#allocation1] sm:$0xff] %v21_v2   ;;  %30 = vst [vmem:[#allocation1 + $0x10] sm:$0xff] %v29_v3  }
   0x7   :  { %26 = vst [vmem:[#allocation1 + $0x8] sm:$0xff] %v25_v4  }
   0xd   :  { %v331_v5 = vld [vmem:[#allocation1] sm:$0xff]   ;;  %v323_v6 = vld [vmem:[#allocation1 + $0x10] sm:$0xff]  }
   0xe   :  { %v327_v7 = vld [vmem:[#allocation1 + $0x8] sm:$0xff]   ;;  %v332_v8 = vunpack.c.l.bf16 %v331_v5  ;;  %v333_v9 = vunpack.c.h.bf16 %v331_v5  ;;  %v324_v10 = vunpack.c.l.bf16 %v323_v6  ;;  %v325_v11 = vunpack.c.h.bf16 %v323_v6 }
   0xf   :  { %v328_v12 = vunpack.c.l.bf16 %v327_v7  ;;  %v329_v13 = vunpack.c.h.bf16 %v327_v7 }
  0x10   :  { %v349_v14 = vpack.i.bf16 %v333_v9, %v332_v8  ;;  %v360_v15 = vpack.i.bf16 %v325_v11, %v324_v10 }
  0x11   :  { %v354_v16 = vpack.i.bf16 %v329_v13, %v328_v12 }
  0x12   :  { %350 = vperm.xlu0 %4, %v349_v14   ;;  %361 = vperm.xlu1 %359, %v360_v15  }
  0x16   :  { %355 = vperm.xlu0 %4, %v354_v16  }
  0x8d   :  { %v351_v17 = vpop.permute.xlu0 %350  ;;  %v362_v18 = vpop.permute.xlu1 %361 }
  0x8e   :  { %v353_v19 = vunpack.i.h.bf16 %v351_v17  ;;  %v352_v20 = vunpack.i.l.bf16 %v351_v17  ;;  %v364_v21 = vunpack.i.h.bf16 %v362_v18  ;;  %v363_v22 = vunpack.i.l.bf16 %v362_v18 }
  0x90   :  { %v337_v23 = vpack.c.bf16 %v353_v19, %v352_v20  ;;  %v347_v24 = vpack.c.bf16 %v364_v21, %v363_v22 }
  0x91   :  { %v356_v25 = vpop.permute.xlu0 %355 }
  0x92   :  { %338 = vst [vmem:[#allocation3] sm:$0xff] %v337_v23   ;;  %348 = vst [vmem:[#allocation3 + $0x10] sm:$0xff] %v347_v24   ;;  %v358_v26 = vunpack.i.h.bf16 %v356_v25  ;;  %v357_v27 = vunpack.i.l.bf16 %v356_v25 }
  0x94   :  { %v342_v28 = vpack.c.bf16 %v358_v26, %v357_v27 }
  0x96   :  { %343 = vst [vmem:[#allocation3 + $0x8] sm:$0xff] %v342_v28  }
  0x99   :  { %v261_v29 = vld [vmem:[#allocation3] sm:$0xff]   ;;  %v269_v30 = vld [vmem:[#allocation3 + $0x10] sm:$0xff]  }
  0x9a   :  { %262 = vst [vmem:[%s394_s1] sm:$0xff] %v261_v29   ;;  %270 = vst [vmem:[%s394_s1 + $0x10] sm:$0xff] %v269_v30  }
  0x9d   :  { %v265_v31 = vld [vmem:[#allocation3 + $0x8] sm:$0xff]  }
  0x9e   :  { %266 = vst [vmem:[%s394_s1 + $0x8] sm:$0xff] %v265_v31  }

// kernel: reverse.22
= control target key start
LH: loop header
LB: loop body
LE: loop exit
PB: predicated region body
PF: predicated region fallthrough
CT: control target
= control target key end

     0   :  { %v2_v0 = vlaneseq  ;;  %s873_s0 = inlined_call_operand.vmem [shape: bf16[2,4,6,6], index: 0, kind: input, shape index: {}]   ;;  %s874_s1 = inlined_call_operand.vmem [shape: bf16[2,4,6,6], index: 1, kind: output, shape index: {}]  }
   0x2   :  { %v3_v1 = vsub.s32 5, %v2_v0 }
   0x4   :  { %4 = vset.pattern.permute.xlu0 %v3_v1 }
   0x5   :  { %819 = vset.pattern.permute.xlu1 %v3_v1  ;;  %v17_v2 = vld [vmem:[%s873_s0] sm:$0xff]  ;;  %v19_v3 = vld [vmem:[%s873_s0 + $0x8] sm:$0xff]  ;;  %v21_v4 = vld [vmem:[%s873_s0 + $0x10] sm:$0xff] }
   0x6   :  { %18 = vst [vmem:[#allocation1] sm:$0xff] %v17_v2  ;;  %20 = vst [vmem:[#allocation1 + $0x8] sm:$0xff] %v19_v3 }
   0x7   :  { %22 = vst [vmem:[#allocation1 + $0x10] sm:$0xff] %v21_v4 }
   0xd   :  { %v406_v5 = vld [vmem:[#allocation1] sm:$0x1]  ;;  %v377_v6 = vld [vmem:[#allocation1 + $0x2] sm:$0x1]  ;;  %v392_v7 = vld [vmem:[#allocation1 + $0x1] sm:$0x1] }
   0xe   :  { %v407_v8 = vunpack.c.l.bf16 %v406_v5  ;;  %v378_v9 = vunpack.c.l.bf16 %v377_v6  ;;  %v393_v10 = vunpack.c.l.bf16 %v392_v7  ;;  %v361_v11 = vld [vmem:[#allocation1 + $0x3] sm:$0x1]  ;;  %v345_v12 = vld [vmem:[#allocation1 + $0x4] sm:$0x1]  ;;  %v329_v13 = vld [vmem:[#allocation1 + $0x5] sm:$0x1] }
   0xf   :  { %v362_v14 = vunpack.c.l.bf16 %v361_v11  ;;  %v346_v15 = vunpack.c.l.bf16 %v345_v12  ;;  %v330_v16 = vunpack.c.l.bf16 %v329_v13  ;;  %v313_v17 = vld [vmem:[#allocation1 + $0x6] sm:$0x1]  ;;  %v297_v18 = vld [vmem:[#allocation1 + $0x7] sm:$0x1]  ;;  %v281_v19 = vld [vmem:[#allocation1 + $0x8] sm:$0x1] }
  0x10   :  { %409 = vst [vmem:[#allocation0 + $0xb0] sm:$0x3] %v407_v8  ;;  %381 = vst [vmem:[#allocation0] sm:$0x3] %v378_v9  ;;  %v314_v20 = vunpack.c.l.bf16 %v313_v17  ;;  %v298_v21 = vunpack.c.l.bf16 %v297_v18  ;;  %v282_v22 = vunpack.c.l.bf16 %v281_v19  ;;  %v265_v23 = vld [vmem:[#allocation1 + $0x9] sm:$0x1] }
  0x11   :  { %396 = vst [vmem:[#allocation0 + $0x98] sm:$0x3] %v393_v10  ;;  %v249_v24 = vld [vmem:[#allocation1 + $0xa] sm:$0x1]  ;;  %v233_v25 = vld [vmem:[#allocation1 + $0xb] sm:$0x1]  ;;  %v266_v26 = vunpack.c.l.bf16 %v265_v23 }
  0x12   :  { %365 = vst [vmem:[#allocation0 + $0x38] sm:$0x3] %v362_v14  ;;  %349 = vst [vmem:[#allocation0 + $0x60] sm:$0x3] %v346_v15  ;;  %v250_v27 = vunpack.c.l.bf16 %v249_v24  ;;  %v234_v28 = vunpack.c.l.bf16 %v233_v25  ;;  %v217_v29 = vld [vmem:[#allocation1 + $0xc] sm:$0x1] }
  0x13   :  { %333 = vst [vmem:[#allocation0 + $0x88] sm:$0x3] %v330_v16  ;;  %v201_v30 = vld [vmem:[#allocation1 + $0xd] sm:$0x1]  ;;  %v185_v31 = vld [vmem:[#allocation1 + $0xe] sm:$0x1]  ;;  %v218_v32 = vunpack.c.l.bf16 %v217_v29 }
  0x14   :  { %317 = vst [vmem:[#allocation0 + $0x50] sm:$0x3] %v314_v20  ;;  %301 = vst [vmem:[#allocation0 + $0x10] sm:$0x3] %v298_v21  ;;  %v202_v33 = vunpack.c.l.bf16 %v201_v30  ;;  %v186_v34 = vunpack.c.l.bf16 %v185_v31  ;;  %v169_v35 = vld [vmem:[#allocation1 + $0xf] sm:$0x1] }
  0x15   :  { %285 = vst [vmem:[#allocation0 + $0x18] sm:$0x3] %v282_v22  ;;  %v153_v36 = vld [vmem:[#allocation1 + $0x10] sm:$0x1]  ;;  %v137_v37 = vld [vmem:[#allocation1 + $0x11] sm:$0x1]  ;;  %v170_v38 = vunpack.c.l.bf16 %v169_v35 }
  0x16   :  { %269 = vst [vmem:[#allocation0 + $0x48] sm:$0x3] %v266_v26  ;;  %253 = vst [vmem:[#allocation0 + $0x68] sm:$0x3] %v250_v27  ;;  %v154_v39 = vunpack.c.l.bf16 %v153_v36  ;;  %v138_v40 = vunpack.c.l.bf16 %v137_v37  ;;  %v121_v41 = vld [vmem:[#allocation1 + $0x12] sm:$0x1] }
  0x17   :  { %237 = vst [vmem:[#allocation0 + $0x80] sm:$0x3] %v234_v28  ;;  %v105_v42 = vld [vmem:[#allocation1 + $0x13] sm:$0x1]  ;;  %v89_v43 = vld [vmem:[#allocation1 + $0x14] sm:$0x1]  ;;  %v122_v44 = vunpack.c.l.bf16 %v121_v41 }
  0x18   :  { %221 = vst [vmem:[#allocation0 + $0x20] sm:$0x3] %v218_v32  ;;  %205 = vst [vmem:[#allocation0 + $0xa0] sm:$0x3] %v202_v33  ;;  %v106_v45 = vunpack.c.l.bf16 %v105_v42  ;;  %v90_v46 = vunpack.c.l.bf16 %v89_v43  ;;  %v73_v47 = vld [vmem:[#allocation1 + $0x15] sm:$0x1] }
  0x19   :  { %189 = vst [vmem:[#allocation0 + $0x28] sm:$0x3] %v186_v34  ;;  %v57_v48 = vld [vmem:[#allocation1 + $0x16] sm:$0x1]  ;;  %v41_v49 = vld [vmem:[#allocation1 + $0x17] sm:$0x1]  ;;  %v74_v50 = vunpack.c.l.bf16 %v73_v47 }
  0x1a   :  { %173 = vst [vmem:[#allocation0 + $0x30] sm:$0x3] %v170_v38  ;;  %157 = vst [vmem:[#allocation0 + $0x40] sm:$0x3] %v154_v39  ;;  %v58_v51 = vunpack.c.l.bf16 %v57_v48  ;;  %v42_v52 = vunpack.c.l.bf16 %v41_v49  ;;  %v410_v53 = vld [vmem:[#allocation0 + $0xb0] sm:$0xff]  ;;  %v422_v54 = vld [vmem:[#allocation0] sm:$0xff] }
  0x1b   :  { %141 = vst [vmem:[#allocation0 + $0x78] sm:$0x3] %v138_v40  ;;  %125 = vst [vmem:[#allocation0 + $0x90] sm:$0x3] %v122_v44  ;;  %411 = vperm.xlu0 %4, %v410_v53   ;;  %423 = vperm.xlu1 %819, %v422_v54   ;;  %v416_v55 = vld [vmem:[#allocation0 + $0x98] sm:$0xff]  ;;  %v434_v57 = vld [vmem:[#allocation0 + $0x60] sm:$0xff] }
  0x1c   :  { %109 = vst [vmem:[#allocation0 + $0x58] sm:$0x3] %v106_v45  ;;  %93 = vst [vmem:[#allocation0 + $0x70] sm:$0x3] %v90_v46  ;;  %v428_v56 = vld [vmem:[#allocation0 + $0x38] sm:$0xff]  ;;  %v440_v58 = vld [vmem:[#allocation0 + $0x88] sm:$0xff] }
  0x1d   :  { %77 = vst [vmem:[#allocation0 + $0xa8] sm:$0x3] %v74_v50  ;;  %61 = vst [vmem:[#allocation0 + $0xb8] sm:$0x3] %v58_v51  ;;  %v446_v59 = vld [vmem:[#allocation0 + $0x50] sm:$0xff]  ;;  %v458_v61 = vld [vmem:[#allocation0 + $0x18] sm:$0xff] }
  0x1e   :  { %45 = vst [vmem:[#allocation0 + $0x8] sm:$0x3] %v42_v52  ;;  %v452_v60 = vld [vmem:[#allocation0 + $0x10] sm:$0xff]  ;;  %v464_v62 = vld [vmem:[#allocation0 + $0x48] sm:$0xff]  ;;  %v476_v0 = vld [vmem:[#allocation0 + $0x80] sm:$0xff]  ;;  %v820_v21 = vmov 0.0  }
  0x1f   :  { %417 = vperm.xlu0 %4, %v416_v55   ;;  %429 = vperm.xlu1 %819, %v428_v56   ;;  %v470_v63 = vld [vmem:[#allocation0 + $0x68] sm:$0xff]  ;;  %v482_v1 = vld [vmem:[#allocation0 + $0x20] sm:$0xff] }
  0x20   :  { %v488_v2 = vld [vmem:[#allocation0 + $0xa0] sm:$0xff]  ;;  %v494_v3 = vld [vmem:[#allocation0 + $0x28] sm:$0xff] }
  0x21   :  { %v500_v4 = vld [vmem:[#allocation0 + $0x30] sm:$0xff]  ;;  %v506_v5 = vld [vmem:[#allocation0 + $0x40] sm:$0xff] }
  0x22   :  { %v512_v6 = vld [vmem:[#allocation0 + $0x78] sm:$0xff]  ;;  %v518_v7 = vld [vmem:[#allocation0 + $0x90] sm:$0xff] }
  0x23   :  { %435 = vperm.xlu0 %4, %v434_v57   ;;  %441 = vperm.xlu1 %819, %v440_v58   ;;  %v524_v8 = vld [vmem:[#allocation0 + $0x58] sm:$0xff]  ;;  %v530_v9 = vld [vmem:[#allocation0 + $0x70] sm:$0xff] }
  0x24   :  { %v536_v10 = vld [vmem:[#allocation0 + $0xa8] sm:$0xff]  ;;  %v542_v11 = vld [vmem:[#allocation0 + $0xb8] sm:$0xff] }
  0x25   :  { %v548_v12 = vld [vmem:[#allocation0 + $0x8] sm:$0xff] }
  0x27   :  { %447 = vperm.xlu0 %4, %v446_v59   ;;  %453 = vperm.xlu1 %819, %v452_v60  }
  0x2b   :  { %459 = vperm.xlu0 %4, %v458_v61   ;;  %465 = vperm.xlu1 %819, %v464_v62  }
  0x2f   :  { %471 = vperm.xlu0 %4, %v470_v63   ;;  %477 = vperm.xlu1 %819, %v476_v0  }
  0x33   :  { %483 = vperm.xlu0 %4, %v482_v1   ;;  %489 = vperm.xlu1 %819, %v488_v2  }
  0x37   :  { %495 = vperm.xlu0 %4, %v494_v3   ;;  %501 = vperm.xlu1 %819, %v500_v4  }
  0x3b   :  { %507 = vperm.xlu0 %4, %v506_v5   ;;  %513 = vperm.xlu1 %819, %v512_v6  }
  0x3f   :  { %519 = vperm.xlu0 %4, %v518_v7   ;;  %525 = vperm.xlu1 %819, %v524_v8  }
  0x43   :  { %531 = vperm.xlu0 %4, %v530_v9   ;;  %537 = vperm.xlu1 %819, %v536_v10  }
  0x47   :  { %543 = vperm.xlu0 %4, %v542_v11   ;;  %549 = vperm.xlu1 %819, %v548_v12  }
  0x96   :  { %v412_v13 = vpop.permute.xlu0 %411  ;;  %v424_v14 = vpop.permute.xlu1 %423 }
  0x97   :  { %413 = vst [vmem:[#allocation2 + $0x30] sm:$0xff] %v412_v13  ;;  %425 = vst [vmem:[#allocation2 + $0x68] sm:$0xff] %v424_v14 }
  0x9a   :  { %v418_v15 = vpop.permute.xlu0 %417  ;;  %v430_v16 = vpop.permute.xlu1 %429 }
  0x9b   :  { %419 = vst [vmem:[#allocation2 + $0x98] sm:$0xff] %v418_v15  ;;  %431 = vst [vmem:[#allocation2 + $0x18] sm:$0xff] %v430_v16 }
  0x9e   :  { %v557_v17 = vld [vmem:[#allocation2 + $0x30] sm:$0x3]  ;;  %v570_v18 = vld [vmem:[#allocation2 + $0x68] sm:$0x3]  ;;  %v436_v19 = vpop.permute.xlu0 %435  ;;  %v442_v20 = vpop.permute.xlu1 %441 }
  0x9f   :  { %v558_v22 = vpack.c.bf16 %v820_v21, %v557_v17  ;;  %v571_v23 = vpack.c.bf16 %v820_v21, %v570_v18  ;;  %437 = vst [vmem:[#allocation2 + $0xa8] sm:$0xff] %v436_v19  ;;  %443 = vst [vmem:[#allocation2 + $0x28] sm:$0xff] %v442_v20 }
  0xa1   :  { %561 = vst [vmem:[#allocation3] sm:$0x1] %v558_v22  ;;  %576 = vst [vmem:[#allocation3 + $0x2] sm:$0x1] %v571_v23 }
  0xa2   :  { %v563_v24 = vld [vmem:[#allocation2 + $0x98] sm:$0x3]  ;;  %v448_v26 = vpop.permute.xlu0 %447  ;;  %v454_v27 = vpop.permute.xlu1 %453 }
  0xa3   :  { %v578_v25 = vld [vmem:[#allocation2 + $0x18] sm:$0x3]  ;;  %v564_v28 = vpack.c.bf16 %v820_v21, %v563_v24  ;;  %449 = vst [vmem:[#allocation2 + $0x78] sm:$0xff] %v448_v26  ;;  %455 = vst [vmem:[#allocation2 + $0x70] sm:$0xff] %v454_v27 }
  0xa4   :  { %v579_v29 = vpack.c.bf16 %v820_v21, %v578_v25 }
  0xa5   :  { %568 = vst [vmem:[#allocation3 + $0x1] sm:$0x1] %v564_v28 }
  0xa6   :  { %584 = vst [vmem:[#allocation3 + $0x3] sm:$0x1] %v579_v29  ;;  %v586_v30 = vld [vmem:[#allocation2 + $0xa8] sm:$0x3]  ;;  %v460_v32 = vpop.permute.xlu0 %459  ;;  %v466_v33 = vpop.permute.xlu1 %465 }
  0xa7   :  { %v594_v31 = vld [vmem:[#allocation2 + $0x28] sm:$0x3]  ;;  %v587_v34 = vpack.c.bf16 %v820_v21, %v586_v30  ;;  %461 = vst [vmem:[#allocation2 + $0xb8] sm:$0xff] %v460_v32  ;;  %467 = vst [vmem:[#allocation2 + $0x60] sm:$0xff] %v466_v33 }
  0xa8   :  { %v595_v35 = vpack.c.bf16 %v820_v21, %v594_v31 }
  0xa9   :  { %592 = vst [vmem:[#allocation3 + $0x4] sm:$0x1] %v587_v34 }
  0xaa   :  { %600 = vst [vmem:[#allocation3 + $0x5] sm:$0x1] %v595_v35  ;;  %v602_v36 = vld [vmem:[#allocation2 + $0x78] sm:$0x3]  ;;  %v610_v37 = vld [vmem:[#allocation2 + $0x70] sm:$0x3]  ;;  %v472_v38 = vpop.permute.xlu0 %471  ;;  %v478_v39 = vpop.permute.xlu1 %477 }
  0xab   :  { %v603_v40 = vpack.c.bf16 %v820_v21, %v602_v36  ;;  %v611_v41 = vpack.c.bf16 %v820_v21, %v610_v37  ;;  %473 = vst [vmem:[#allocation2 + $0xb0] sm:$0xff] %v472_v38  ;;  %479 = vst [vmem:[#allocation2 + $0x20] sm:$0xff] %v478_v39 }
  0xad   :  { %608 = vst [vmem:[#allocation3 + $0x6] sm:$0x1] %v603_v40  ;;  %616 = vst [vmem:[#allocation3 + $0x7] sm:$0x1] %v611_v41 }
  0xae   :  { %v618_v42 = vld [vmem:[#allocation2 + $0xb8] sm:$0x3]  ;;  %v626_v43 = vld [vmem:[#allocation2 + $0x60] sm:$0x3]  ;;  %v484_v44 = vpop.permute.xlu0 %483  ;;  %v490_v45 = vpop.permute.xlu1 %489 }
  0xaf   :  { %v619_v46 = vpack.c.bf16 %v820_v21, %v618_v42  ;;  %v627_v47 = vpack.c.bf16 %v820_v21, %v626_v43  ;;  %485 = vst [vmem:[#allocation2 + $0x40] sm:$0xff] %v484_v44  ;;  %491 = vst [vmem:[#allocation2 + $0x10] sm:$0xff] %v490_v45 }
  0xb1   :  { %624 = vst [vmem:[#allocation3 + $0x8] sm:$0x1] %v619_v46  ;;  %632 = vst [vmem:[#allocation3 + $0x9] sm:$0x1] %v627_v47 }
  0xb2   :  { %v634_v48 = vld [vmem:[#allocation2 + $0xb0] sm:$0x3]  ;;  %v642_v49 = vld [vmem:[#allocation2 + $0x20] sm:$0x3]  ;;  %v496_v50 = vpop.permute.xlu0 %495  ;;  %v502_v51 = vpop.permute.xlu1 %501 }
  0xb3   :  { %v635_v52 = vpack.c.bf16 %v820_v21, %v634_v48  ;;  %v643_v53 = vpack.c.bf16 %v820_v21, %v642_v49  ;;  %497 = vst [vmem:[#allocation2 + $0x50] sm:$0xff] %v496_v50  ;;  %503 = vst [vmem:[#allocation2 + $0xa0] sm:$0xff] %v502_v51 }
  0xb4   :  { %v757_v54 = vld [vmem:[#allocation3] sm:$0xff] }
  0xb5   :  { %758 = vst [vmem:[%s874_s1] sm:$0xff] %v757_v54  ;;  %640 = vst [vmem:[#allocation3 + $0xa] sm:$0x1] %v635_v52 }
  0xb6   :  { %648 = vst [vmem:[#allocation3 + $0xb] sm:$0x1] %v643_v53  ;;  %v650_v55 = vld [vmem:[#allocation2 + $0x40] sm:$0x3]  ;;  %v658_v56 = vld [vmem:[#allocation2 + $0x10] sm:$0x3]  ;;  %v508_v57 = vpop.permute.xlu0 %507  ;;  %v514_v58 = vpop.permute.xlu1 %513 }
  0xb7   :  { %v651_v59 = vpack.c.bf16 %v820_v21, %v650_v55  ;;  %v659_v60 = vpack.c.bf16 %v820_v21, %v658_v56  ;;  %509 = vst [vmem:[#allocation2 + $0x58] sm:$0xff] %v508_v57  ;;  %515 = vst [vmem:[#allocation2 + $0x38] sm:$0xff] %v514_v58 }
  0xb9   :  { %656 = vst [vmem:[#allocation3 + $0xc] sm:$0x1] %v651_v59  ;;  %664 = vst [vmem:[#allocation3 + $0xd] sm:$0x1] %v659_v60 }
  0xba   :  { %v666_v61 = vld [vmem:[#allocation2 + $0x50] sm:$0x3]  ;;  %v674_v62 = vld [vmem:[#allocation2 + $0xa0] sm:$0x3]  ;;  %v520_v63 = vpop.permute.xlu0 %519  ;;  %v526_v0 = vpop.permute.xlu1 %525 }
  0xbb   :  { %v667_v1 = vpack.c.bf16 %v820_v21, %v666_v61  ;;  %v675_v2 = vpack.c.bf16 %v820_v21, %v674_v62  ;;  %521 = vst [vmem:[#allocation2] sm:$0xff] %v520_v63  ;;  %527 = vst [vmem:[#allocation2 + $0x88] sm:$0xff] %v526_v0 }
  0xbd   :  { %672 = vst [vmem:[#allocation3 + $0xe] sm:$0x1] %v667_v1  ;;  %680 = vst [vmem:[#allocation3 + $0xf] sm:$0x1] %v675_v2 }
  0xbe   :  { %v682_v3 = vld [vmem:[#allocation2 + $0x58] sm:$0x3]  ;;  %v532_v5 = vpop.permute.xlu0 %531  ;;  %v538_v6 = vpop.permute.xlu1 %537 }
  0xbf   :  { %v690_v4 = vld [vmem:[#allocation2 + $0x38] sm:$0x3]  ;;  %v683_v7 = vpack.c.bf16 %v820_v21, %v682_v3  ;;  %533 = vst [vmem:[#allocation2 + $0x48] sm:$0xff] %v532_v5  ;;  %539 = vst [vmem:[#allocation2 + $0x80] sm:$0xff] %v538_v6 }
  0xc0   :  { %v691_v8 = vpack.c.bf16 %v820_v21, %v690_v4 }
  0xc1   :  { %688 = vst [vmem:[#allocation3 + $0x10] sm:$0x1] %v683_v7 }
  0xc2   :  { %696 = vst [vmem:[#allocation3 + $0x11] sm:$0x1] %v691_v8  ;;  %v698_v9 = vld [vmem:[#allocation2] sm:$0x3]  ;;  %v706_v10 = vld [vmem:[#allocation2 + $0x88] sm:$0x3]  ;;  %v544_v11 = vpop.permute.xlu0 %543  ;;  %v550_v12 = vpop.permute.xlu1 %549 }
  0xc3   :  { %v699_v13 = vpack.c.bf16 %v820_v21, %v698_v9  ;;  %v707_v14 = vpack.c.bf16 %v820_v21, %v706_v10  ;;  %545 = vst [vmem:[#allocation2 + $0x8] sm:$0xff] %v544_v11  ;;  %551 = vst [vmem:[#allocation2 + $0x90] sm:$0xff] %v550_v12 }
  0xc4   :  { %v759_v15 = vld [vmem:[#allocation3 + $0x8] sm:$0xff] }
  0xc5   :  { %760 = vst [vmem:[%s874_s1 + $0x8] sm:$0xff] %v759_v15  ;;  %704 = vst [vmem:[#allocation3 + $0x12] sm:$0x1] %v699_v13 }
  0xc6   :  { %712 = vst [vmem:[#allocation3 + $0x13] sm:$0x1] %v707_v14  ;;  %v714_v16 = vld [vmem:[#allocation2 + $0x48] sm:$0x3]  ;;  %v722_v17 = vld [vmem:[#allocation2 + $0x80] sm:$0x3] }
  0xc7   :  { %v715_v18 = vpack.c.bf16 %v820_v21, %v714_v16  ;;  %v723_v19 = vpack.c.bf16 %v820_v21, %v722_v17 }
  0xc9   :  { %720 = vst [vmem:[#allocation3 + $0x14] sm:$0x1] %v715_v18  ;;  %728 = vst [vmem:[#allocation3 + $0x15] sm:$0x1] %v723_v19 }
  0xca   :  { %v730_v20 = vld [vmem:[#allocation2 + $0x8] sm:$0x3]  ;;  %v738_v22 = vld [vmem:[#allocation2 + $0x90] sm:$0x3] }
  0xcb   :  { %v731_v23 = vpack.c.bf16 %v820_v21, %v730_v20  ;;  %v739_v21 = vpack.c.bf16 %v820_v21, %v738_v22 }
  0xcd   :  { %736 = vst [vmem:[#allocation3 + $0x16] sm:$0x1] %v731_v23  ;;  %744 = vst [vmem:[#allocation3 + $0x17] sm:$0x1] %v739_v21 }
  0xd4   :  { %v761_v24 = vld [vmem:[#allocation3 + $0x10] sm:$0xff] }
  0xd5   :  { %762 = vst [vmem:[%s874_s1 + $0x10] sm:$0xff] %v761_v24 }

// kernel: reverse.8
= control target key start
LH: loop header
LB: loop body
LE: loop exit
PB: predicated region body
PF: predicated region fallthrough
CT: control target
= control target key end

     0   :  { %v2_v0 = vlaneseq  ;;  %s1220_s0 = inlined_call_operand.vmem [shape: bf16[2,3,11,11], index: 0, kind: input, shape index: {}]   ;;  %s1221_s1 = inlined_call_operand.vmem [shape: bf16[2,3,11,11], index: 1, kind: output, shape index: {}]  }
   0x2   :  { %v3_v1 = vsub.s32 10, %v2_v0 }
   0x4   :  { %4 = vset.pattern.permute.xlu0 %v3_v1 }
   0x5   :  { %1145 = vset.pattern.permute.xlu1 %v3_v1  ;;  %v19_v2 = vld [vmem:[%s1220_s0] sm:$0xff]  ;;  %v21_v3 = vld [vmem:[%s1220_s0 + $0x8] sm:$0xff]  ;;  %v23_v4 = vld [vmem:[%s1220_s0 + $0x10] sm:$0xff] }
   0x6   :  { %20 = vst [vmem:[#allocation1] sm:$0xff] %v19_v2  ;;  %22 = vst [vmem:[#allocation1 + $0x8] sm:$0xff] %v21_v3  ;;  %v25_v5 = vld [vmem:[%s1220_s0 + $0x18] sm:$0xff]  ;;  %v1142_v6 = vld [vmem:[%s1220_s0 + $0x20] sm:$0x1] }
   0x7   :  { %24 = vst [vmem:[#allocation1 + $0x10] sm:$0xff] %v23_v4  ;;  %26 = vst [vmem:[#allocation1 + $0x18] sm:$0xff] %v25_v5 }
   0x8   :  { %38 = vst [vmem:[#allocation1 + $0x20] sm:$0x1] %v1142_v6 }
   0xd   :  { %v564_v7 = vld [vmem:[#allocation1] sm:$0x1]  ;;  %v535_v8 = vld [vmem:[#allocation1 + $0x2] sm:$0x1]  ;;  %v550_v9 = vld [vmem:[#allocation1 + $0x1] sm:$0x1] }
   0xe   :  { %v565_v10 = vunpack.c.l.bf16 %v564_v7  ;;  %v536_v11 = vunpack.c.l.bf16 %v535_v8  ;;  %v551_v12 = vunpack.c.l.bf16 %v550_v9  ;;  %v519_v13 = vld [vmem:[#allocation1 + $0x3] sm:$0x1]  ;;  %v503_v14 = vld [vmem:[#allocation1 + $0x4] sm:$0x1]  ;;  %v487_v15 = vld [vmem:[#allocation1 + $0x5] sm:$0x1] }
   0xf   :  { %v520_v16 = vunpack.c.l.bf16 %v519_v13  ;;  %v504_v17 = vunpack.c.l.bf16 %v503_v14  ;;  %v488_v18 = vunpack.c.l.bf16 %v487_v15  ;;  %v471_v19 = vld [vmem:[#allocation1 + $0x6] sm:$0x1]  ;;  %v455_v20 = vld [vmem:[#allocation1 + $0x7] sm:$0x1]  ;;  %v439_v21 = vld [vmem:[#allocation1 + $0x8] sm:$0x1] }
  0x10   :  { %567 = vst [vmem:[#allocation0 + $0x60] sm:$0x3] %v565_v10  ;;  %539 = vst [vmem:[#allocation0 + $0xa8] sm:$0x3] %v536_v11  ;;  %v472_v22 = vunpack.c.l.bf16 %v471_v19  ;;  %v456_v23 = vunpack.c.l.bf16 %v455_v20  ;;  %v440_v24 = vunpack.c.l.bf16 %v439_v21  ;;  %v423_v25 = vld [vmem:[#allocation1 + $0x9] sm:$0x1] }
  0x11   :  { %554 = vst [vmem:[#allocation0 + $0x10] sm:$0x3] %v551_v12  ;;  %v407_v26 = vld [vmem:[#allocation1 + $0xa] sm:$0x1]  ;;  %v391_v27 = vld [vmem:[#allocation1 + $0xb] sm:$0x1]  ;;  %v424_v28 = vunpack.c.l.bf16 %v423_v25 }
  0x12   :  { %523 = vst [vmem:[#allocation0 + $0x58] sm:$0x3] %v520_v16  ;;  %507 = vst [vmem:[#allocation0 + $0x90] sm:$0x3] %v504_v17  ;;  %v408_v29 = vunpack.c.l.bf16 %v407_v26  ;;  %v392_v30 = vunpack.c.l.bf16 %v391_v27  ;;  %v375_v31 = vld [vmem:[#allocation1 + $0xc] sm:$0x1] }
  0x13   :  { %491 = vst [vmem:[#allocation0 + $0x20] sm:$0x3] %v488_v18  ;;  %v359_v32 = vld [vmem:[#allocation1 + $0xd] sm:$0x1]  ;;  %v343_v33 = vld [vmem:[#allocation1 + $0xe] sm:$0x1]  ;;  %v376_v34 = vunpack.c.l.bf16 %v375_v31 }
  0x14   :  { %475 = vst [vmem:[#allocation0 + $0xf0] sm:$0x3] %v472_v22  ;;  %459 = vst [vmem:[#allocation0 + $0xf8] sm:$0x3] %v456_v23  ;;  %v360_v35 = vunpack.c.l.bf16 %v359_v32  ;;  %v344_v36 = vunpack.c.l.bf16 %v343_v33  ;;  %v327_v37 = vld [vmem:[#allocation1 + $0xf] sm:$0x1] }
  0x15   :  { %443 = vst [vmem:[#allocation0 + $0x38] sm:$0x3] %v440_v24  ;;  %v311_v38 = vld [vmem:[#allocation1 + $0x10] sm:$0x1]  ;;  %v295_v39 = vld [vmem:[#allocation1 + $0x11] sm:$0x1]  ;;  %v328_v40 = vunpack.c.l.bf16 %v327_v37 }
  0x16   :  { %427 = vst [vmem:[#allocation0 + $0x88] sm:$0x3] %v424_v28  ;;  %411 = vst [vmem:[#allocation0 + $0x68] sm:$0x3] %v408_v29  ;;  %v312_v41 = vunpack.c.l.bf16 %v311_v38  ;;  %v296_v42 = vunpack.c.l.bf16 %v295_v39  ;;  %v279_v43 = vld [vmem:[#allocation1 + $0x12] sm:$0x1] }
  0x17   :  { %395 = vst [vmem:[#allocation0 + $0xe0] sm:$0x3] %v392_v30  ;;  %v263_v44 = vld [vmem:[#allocation1 + $0x13] sm:$0x1]  ;;  %v247_v45 = vld [vmem:[#allocation1 + $0x14] sm:$0x1]  ;;  %v280_v46 = vunpack.c.l.bf16 %v279_v43 }
  0x18   :  { %379 = vst [vmem:[#allocation0 + $0x30] sm:$0x3] %v376_v34  ;;  %363 = vst [vmem:[#allocation0 + $0xc8] sm:$0x3] %v360_v35  ;;  %v264_v47 = vunpack.c.l.bf16 %v263_v44  ;;  %v248_v48 = vunpack.c.l.bf16 %v247_v45  ;;  %v231_v49 = vld [vmem:[#allocation1 + $0x15] sm:$0x1] }
  0x19   :  { %347 = vst [vmem:[#allocation0 + $0xa0] sm:$0x3] %v344_v36  ;;  %v215_v50 = vld [vmem:[#allocation1 + $0x16] sm:$0x1]  ;;  %v199_v51 = vld [vmem:[#allocation1 + $0x17] sm:$0x1]  ;;  %v232_v52 = vunpack.c.l.bf16 %v231_v49 }
  0x1a   :  { %331 = vst [vmem:[#allocation0 + $0x70] sm:$0x3] %v328_v40  ;;  %315 = vst [vmem:[#allocation0 + $0xc0] sm:$0x3] %v312_v41  ;;  %v216_v53 = vunpack.c.l.bf16 %v215_v50  ;;  %v200_v54 = vunpack.c.l.bf16 %v199_v51  ;;  %v183_v55 = vld [vmem:[#allocation1 + $0x18] sm:$0x1] }
  0x1b   :  { %299 = vst [vmem:[#allocation0 + $0x48] sm:$0x3] %v296_v42  ;;  %v167_v56 = vld [vmem:[#allocation1 + $0x19] sm:$0x1]  ;;  %v151_v57 = vld [vmem:[#allocation1 + $0x1a] sm:$0x1]  ;;  %v184_v58 = vunpack.c.l.bf16 %v183_v55 }
  0x1c   :  { %283 = vst [vmem:[#allocation0 + $0x8] sm:$0x3] %v280_v46  ;;  %267 = vst [vmem:[#allocation0 + $0xd8] sm:$0x3] %v264_v47  ;;  %v168_v59 = vunpack.c.l.bf16 %v167_v56  ;;  %v152_v60 = vunpack.c.l.bf16 %v151_v57  ;;  %v135_v61 = vld [vmem:[#allocation1 + $0x1b] sm:$0x1] }
  0x1d   :  { %251 = vst [vmem:[#allocation0 + $0x40] sm:$0x3] %v248_v48  ;;  %v119_v62 = vld [vmem:[#allocation1 + $0x1c] sm:$0x1]  ;;  %v103_v63 = vld [vmem:[#allocation1 + $0x1d] sm:$0x1]  ;;  %v136_v2 = vunpack.c.l.bf16 %v135_v61 }
  0x1e   :  { %v568_v0 = vld [vmem:[#allocation0 + $0x60] sm:$0xff]  ;;  %v580_v1 = vld [vmem:[#allocation0 + $0xa8] sm:$0xff]  ;;  %235 = vst [vmem:[#allocation0] sm:$0x3] %v232_v52  ;;  %219 = vst [vmem:[#allocation0 + $0x18] sm:$0x3] %v216_v53  ;;  %v120_v3 = vunpack.c.l.bf16 %v119_v62  ;;  %v104_v4 = vunpack.c.l.bf16 %v103_v63 }
  0x1f   :  { %203 = vst [vmem:[#allocation0 + $0x78] sm:$0x3] %v200_v54  ;;  %569 = vperm.xlu0 %4, %v568_v0   ;;  %581 = vperm.xlu1 %1145, %v580_v1   ;;  %187 = vst [vmem:[#allocation0 + $0x80] sm:$0x3] %v184_v58  ;;  %v574_v5 = vld [vmem:[#allocation0 + $0x10] sm:$0xff]  ;;  %v586_v6 = vld [vmem:[#allocation0 + $0x58] sm:$0xff] }
  0x20   :  { %171 = vst [vmem:[#allocation0 + $0xb8] sm:$0x3] %v168_v59  ;;  %155 = vst [vmem:[#allocation0 + $0xd0] sm:$0x3] %v152_v60  ;;  %v592_v7 = vld [vmem:[#allocation0 + $0x90] sm:$0xff]  ;;  %v598_v8 = vld [vmem:[#allocation0 + $0x20] sm:$0xff] }
  0x21   :  { %139 = vst [vmem:[#allocation0 + $0x98] sm:$0x3] %v136_v2  ;;  %123 = vst [vmem:[#allocation0 + $0xb0] sm:$0x3] %v120_v3  ;;  %v604_v9 = vld [vmem:[#allocation0 + $0xf0] sm:$0xff]  ;;  %v610_v10 = vld [vmem:[#allocation0 + $0xf8] sm:$0xff] }
  0x22   :  { %107 = vst [vmem:[#allocation0 + $0xe8] sm:$0x3] %v104_v4  ;;  %v87_v11 = vld [vmem:[#allocation1 + $0x1e] sm:$0x1]  ;;  %v71_v12 = vld [vmem:[#allocation1 + $0x1f] sm:$0x1] }
  0x23   :  { %575 = vperm.xlu0 %4, %v574_v5   ;;  %587 = vperm.xlu1 %1145, %v586_v6   ;;  %v55_v13 = vld [vmem:[#allocation1 + $0x20] sm:$0x1]  ;;  %v88_v14 = vunpack.c.l.bf16 %v87_v11  ;;  %v72_v15 = vunpack.c.l.bf16 %v71_v12  ;;  %v616_v17 = vld [vmem:[#allocation0 + $0x38] sm:$0xff]  ;;  %v634_v20 = vld [vmem:[#allocation0 + $0xe0] sm:$0xff]  ;;  %v1146_v50 = vmov 0.0  }
  0x24   :  { %v56_v16 = vunpack.c.l.bf16 %v55_v13  ;;  %v622_v18 = vld [vmem:[#allocation0 + $0x88] sm:$0xff]  ;;  %v640_v21 = vld [vmem:[#allocation0 + $0x30] sm:$0xff]  ;;  %v652_v23 = vld [vmem:[#allocation0 + $0xa0] sm:$0xff] }
  0x25   :  { %91 = vst [vmem:[#allocation0 + $0x28] sm:$0x3] %v88_v14  ;;  %75 = vst [vmem:[#allocation0 + $0x100] sm:$0x3] %v72_v15  ;;  %v628_v19 = vld [vmem:[#allocation0 + $0x68] sm:$0xff]  ;;  %v658_v24 = vld [vmem:[#allocation0 + $0x70] sm:$0xff] }
  0x26   :  { %59 = vst [vmem:[#allocation0 + $0x50] sm:$0x3] %v56_v16  ;;  %v646_v22 = vld [vmem:[#allocation0 + $0xc8] sm:$0xff]  ;;  %v664_v25 = vld [vmem:[#allocation0 + $0xc0] sm:$0xff]  ;;  %v682_v28 = vld [vmem:[#allocation0 + $0xd8] sm:$0xff] }
  0x27   :  { %593 = vperm.xlu0 %4, %v592_v7   ;;  %599 = vperm.xlu1 %1145, %v598_v8   ;;  %v670_v26 = vld [vmem:[#allocation0 + $0x48] sm:$0xff]  ;;  %v688_v29 = vld [vmem:[#allocation0 + $0x40] sm:$0xff]  ;;  %v700_v31 = vld [vmem:[#allocation0 + $0x18] sm:$0xff] }
  0x28   :  { %v676_v27 = vld [vmem:[#allocation0 + $0x8] sm:$0xff]  ;;  %v694_v30 = vld [vmem:[#allocation0] sm:$0xff]  ;;  %v706_v32 = vld [vmem:[#allocation0 + $0x78] sm:$0xff] }
  0x29   :  { %v712_v33 = vld [vmem:[#allocation0 + $0x80] sm:$0xff]  ;;  %v718_v34 = vld [vmem:[#allocation0 + $0xb8] sm:$0xff]  ;;  %v724_v35 = vld [vmem:[#allocation0 + $0xd0] sm:$0xff] }
  0x2a   :  { %v730_v36 = vld [vmem:[#allocation0 + $0x98] sm:$0xff]  ;;  %v736_v37 = vld [vmem:[#allocation0 + $0xb0] sm:$0xff]  ;;  %v742_v38 = vld [vmem:[#allocation0 + $0xe8] sm:$0xff] }
  0x2b   :  { %605 = vperm.xlu0 %4, %v604_v9   ;;  %611 = vperm.xlu1 %1145, %v610_v10  }
  0x2c   :  { %v748_v39 = vld [vmem:[#allocation0 + $0x28] sm:$0xff]  ;;  %v754_v40 = vld [vmem:[#allocation0 + $0x100] sm:$0xff] }
  0x2d   :  { %v760_v41 = vld [vmem:[#allocation0 + $0x50] sm:$0xff] }
  0x2f   :  { %617 = vperm.xlu0 %4, %v616_v17   ;;  %623 = vperm.xlu1 %1145, %v622_v18  }
  0x33   :  { %629 = vperm.xlu0 %4, %v628_v19   ;;  %635 = vperm.xlu1 %1145, %v634_v20  }
  0x37   :  { %641 = vperm.xlu0 %4, %v640_v21   ;;  %647 = vperm.xlu1 %1145, %v646_v22  }
  0x3b   :  { %653 = vperm.xlu0 %4, %v652_v23   ;;  %659 = vperm.xlu1 %1145, %v658_v24  }
  0x3f   :  { %665 = vperm.xlu0 %4, %v664_v25   ;;  %671 = vperm.xlu1 %1145, %v670_v26  }
  0x43   :  { %677 = vperm.xlu0 %4, %v676_v27   ;;  %683 = vperm.xlu1 %1145, %v682_v28  }
  0x47   :  { %689 = vperm.xlu0 %4, %v688_v29   ;;  %695 = vperm.xlu1 %1145, %v694_v30  }
  0x4b   :  { %701 = vperm.xlu0 %4, %v700_v31   ;;  %707 = vperm.xlu1 %1145, %v706_v32  }
  0x4f   :  { %713 = vperm.xlu0 %4, %v712_v33   ;;  %719 = vperm.xlu1 %1145, %v718_v34  }
  0x53   :  { %725 = vperm.xlu0 %4, %v724_v35   ;;  %731 = vperm.xlu1 %1145, %v730_v36  }
  0x57   :  { %737 = vperm.xlu0 %4, %v736_v37   ;;  %743 = vperm.xlu1 %1145, %v742_v38  }
  0x5b   :  { %749 = vperm.xlu0 %4, %v748_v39   ;;  %755 = vperm.xlu1 %1145, %v754_v40  }
  0x5f   :  { %761 = vperm.xlu0 %4, %v760_v41  }
  0x9a   :  { %v570_v42 = vpop.permute.xlu0 %569  ;;  %v582_v43 = vpop.permute.xlu1 %581 }
  0x9b   :  { %571 = vst [vmem:[#allocation2 + $0x80] sm:$0xff] %v570_v42  ;;  %583 = vst [vmem:[#allocation2 + $0xe8] sm:$0xff] %v582_v43 }
  0x9e   :  { %v576_v44 = vpop.permute.xlu0 %575  ;;  %v588_v45 = vpop.permute.xlu1 %587 }
  0x9f   :  { %577 = vst [vmem:[#allocation2 + $0xc8] sm:$0xff] %v576_v44  ;;  %589 = vst [vmem:[#allocation2 + $0x78] sm:$0xff] %v588_v45 }
  0xa2   :  { %v769_v46 = vld [vmem:[#allocation2 + $0x80] sm:$0x3]  ;;  %v782_v47 = vld [vmem:[#allocation2 + $0xe8] sm:$0x3]  ;;  %v594_v48 = vpop.permute.xlu0 %593  ;;  %v600_v49 = vpop.permute.xlu1 %599 }
  0xa3   :  { %v770_v51 = vpack.c.bf16 %v1146_v50, %v769_v46  ;;  %v783_v52 = vpack.c.bf16 %v1146_v50, %v782_v47  ;;  %595 = vst [vmem:[#allocation2 + $0x8] sm:$0xff] %v594_v48  ;;  %601 = vst [vmem:[#allocation2 + $0x90] sm:$0xff] %v600_v49 }
  0xa5   :  { %773 = vst [vmem:[#allocation3] sm:$0x1] %v770_v51  ;;  %788 = vst [vmem:[#allocation3 + $0x2] sm:$0x1] %v783_v52 }
  0xa6   :  { %v775_v53 = vld [vmem:[#allocation2 + $0xc8] sm:$0x3]  ;;  %v790_v54 = vld [vmem:[#allocation2 + $0x78] sm:$0x3]  ;;  %v606_v55 = vpop.permute.xlu0 %605  ;;  %v612_v56 = vpop.permute.xlu1 %611 }
  0xa7   :  { %v776_v57 = vpack.c.bf16 %v1146_v50, %v775_v53  ;;  %v791_v58 = vpack.c.bf16 %v1146_v50, %v790_v54  ;;  %607 = vst [vmem:[#allocation2 + $0x58] sm:$0xff] %v606_v55  ;;  %613 = vst [vmem:[#allocation2 + $0xa8] sm:$0xff] %v612_v56 }
  0xa9   :  { %780 = vst [vmem:[#allocation3 + $0x1] sm:$0x1] %v776_v57  ;;  %796 = vst [vmem:[#allocation3 + $0x3] sm:$0x1] %v791_v58 }
  0xaa   :  { %v798_v59 = vld [vmem:[#allocation2 + $0x8] sm:$0x3]  ;;  %v806_v60 = vld [vmem:[#allocation2 + $0x90] sm:$0x3]  ;;  %v618_v61 = vpop.permute.xlu0 %617  ;;  %v624_v62 = vpop.permute.xlu1 %623 }
  0xab   :  { %v799_v63 = vpack.c.bf16 %v1146_v50, %v798_v59  ;;  %v807_v0 = vpack.c.bf16 %v1146_v50, %v806_v60  ;;  %619 = vst [vmem:[#allocation2 + $0xd0] sm:$0xff] %v618_v61  ;;  %625 = vst [vmem:[#allocation2 + $0xb0] sm:$0xff] %v624_v62 }
  0xad   :  { %804 = vst [vmem:[#allocation3 + $0x4] sm:$0x1] %v799_v63  ;;  %812 = vst [vmem:[#allocation3 + $0x5] sm:$0x1] %v807_v0 }
  0xae   :  { %v814_v1 = vld [vmem:[#allocation2 + $0x58] sm:$0x3]  ;;  %v822_v2 = vld [vmem:[#allocation2 + $0xa8] sm:$0x3]  ;;  %v630_v3 = vpop.permute.xlu0 %629  ;;  %v636_v4 = vpop.permute.xlu1 %635 }
  0xaf   :  { %v815_v5 = vpack.c.bf16 %v1146_v50, %v814_v1  ;;  %v823_v6 = vpack.c.bf16 %v1146_v50, %v822_v2  ;;  %631 = vst [vmem:[#allocation2 + $0x38] sm:$0xff] %v630_v3  ;;  %637 = vst [vmem:[#allocation2 + $0x40] sm:$0xff] %v636_v4 }
  0xb1   :  { %820 = vst [vmem:[#allocation3 + $0x6] sm:$0x1] %v815_v5  ;;  %828 = vst [vmem:[#allocation3 + $0x7] sm:$0x1] %v823_v6 }
  0xb2   :  { %v830_v7 = vld [vmem:[#allocation2 + $0xd0] sm:$0x3]  ;;  %v642_v9 = vpop.permute.xlu0 %641  ;;  %v648_v10 = vpop.permute.xlu1 %647 }
  0xb3   :  { %v838_v8 = vld [vmem:[#allocation2 + $0xb0] sm:$0x3]  ;;  %v831_v11 = vpack.c.bf16 %v1146_v50, %v830_v7  ;;  %643 = vst [vmem:[#allocation2 + $0xe0] sm:$0xff] %v642_v9  ;;  %649 = vst [vmem:[#allocation2 + $0x100] sm:$0xff] %v648_v10 }
  0xb4   :  { %v839_v12 = vpack.c.bf16 %v1146_v50, %v838_v8 }
  0xb5   :  { %836 = vst [vmem:[#allocation3 + $0x8] sm:$0x1] %v831_v11 }
  0xb6   :  { %844 = vst [vmem:[#allocation3 + $0x9] sm:$0x1] %v839_v12  ;;  %v846_v13 = vld [vmem:[#allocation2 + $0x38] sm:$0x3]  ;;  %v854_v14 = vld [vmem:[#allocation2 + $0x40] sm:$0x3]  ;;  %v654_v15 = vpop.permute.xlu0 %653  ;;  %v660_v16 = vpop.permute.xlu1 %659 }
  0xb7   :  { %v847_v17 = vpack.c.bf16 %v1146_v50, %v846_v13  ;;  %v855_v18 = vpack.c.bf16 %v1146_v50, %v854_v14  ;;  %655 = vst [vmem:[#allocation2 + $0x10] sm:$0xff] %v654_v15  ;;  %661 = vst [vmem:[#allocation2] sm:$0xff] %v660_v16 }
  0xb8   :  { %v1043_v19 = vld [vmem:[#allocation3] sm:$0xff] }
  0xb9   :  { %1044 = vst [vmem:[%s1221_s1] sm:$0xff] %v1043_v19  ;;  %852 = vst [vmem:[#allocation3 + $0xa] sm:$0x1] %v847_v17 }
  0xba   :  { %860 = vst [vmem:[#allocation3 + $0xb] sm:$0x1] %v855_v18  ;;  %v862_v20 = vld [vmem:[#allocation2 + $0xe0] sm:$0x3]  ;;  %v666_v22 = vpop.permute.xlu0 %665  ;;  %v672_v23 = vpop.permute.xlu1 %671 }
  0xbb   :  { %v870_v21 = vld [vmem:[#allocation2 + $0x100] sm:$0x3]  ;;  %v863_v24 = vpack.c.bf16 %v1146_v50, %v862_v20  ;;  %667 = vst [vmem:[#allocation2 + $0x70] sm:$0xff] %v666_v22  ;;  %673 = vst [vmem:[#allocation2 + $0xf0] sm:$0xff] %v672_v23 }
  0xbc   :  { %v871_v25 = vpack.c.bf16 %v1146_v50, %v870_v21 }
  0xbd   :  { %868 = vst [vmem:[#allocation3 + $0xc] sm:$0x1] %v863_v24 }
  0xbe   :  { %876 = vst [vmem:[#allocation3 + $0xd] sm:$0x1] %v871_v25  ;;  %v878_v26 = vld [vmem:[#allocation2 + $0x10] sm:$0x3]  ;;  %v886_v27 = vld [vmem:[#allocation2] sm:$0x3]  ;;  %v678_v28 = vpop.permute.xlu0 %677  ;;  %v684_v29 = vpop.permute.xlu1 %683 }
  0xbf   :  { %v879_v30 = vpack.c.bf16 %v1146_v50, %v878_v26  ;;  %v887_v31 = vpack.c.bf16 %v1146_v50, %v886_v27  ;;  %679 = vst [vmem:[#allocation2 + $0x18] sm:$0xff] %v678_v28  ;;  %685 = vst [vmem:[#allocation2 + $0x48] sm:$0xff] %v684_v29 }
  0xc1   :  { %884 = vst [vmem:[#allocation3 + $0xe] sm:$0x1] %v879_v30  ;;  %892 = vst [vmem:[#allocation3 + $0xf] sm:$0x1] %v887_v31 }
  0xc2   :  { %v894_v32 = vld [vmem:[#allocation2 + $0x70] sm:$0x3]  ;;  %v690_v34 = vpop.permute.xlu0 %689  ;;  %v696_v35 = vpop.permute.xlu1 %695 }
  0xc3   :  { %v902_v33 = vld [vmem:[#allocation2 + $0xf0] sm:$0x3]  ;;  %v895_v36 = vpack.c.bf16 %v1146_v50, %v894_v32  ;;  %691 = vst [vmem:[#allocation2 + $0x50] sm:$0xff] %v690_v34  ;;  %697 = vst [vmem:[#allocation2 + $0x60] sm:$0xff] %v696_v35 }
  0xc4   :  { %v903_v37 = vpack.c.bf16 %v1146_v50, %v902_v33 }
  0xc5   :  { %900 = vst [vmem:[#allocation3 + $0x10] sm:$0x1] %v895_v36 }
  0xc6   :  { %908 = vst [vmem:[#allocation3 + $0x11] sm:$0x1] %v903_v37  ;;  %v910_v38 = vld [vmem:[#allocation2 + $0x18] sm:$0x3]  ;;  %v918_v39 = vld [vmem:[#allocation2 + $0x48] sm:$0x3]  ;;  %v702_v40 = vpop.permute.xlu0 %701  ;;  %v708_v41 = vpop.permute.xlu1 %707 }
  0xc7   :  { %v911_v42 = vpack.c.bf16 %v1146_v50, %v910_v38  ;;  %v919_v43 = vpack.c.bf16 %v1146_v50, %v918_v39  ;;  %703 = vst [vmem:[#allocation2 + $0xd8] sm:$0xff] %v702_v40  ;;  %709 = vst [vmem:[#allocation2 + $0x30] sm:$0xff] %v708_v41 }
  0xc8   :  { %v1045_v44 = vld [vmem:[#allocation3 + $0x8] sm:$0xff] }
  0xc9   :  { %1046 = vst [vmem:[%s1221_s1 + $0x8] sm:$0xff] %v1045_v44  ;;  %916 = vst [vmem:[#allocation3 + $0x12] sm:$0x1] %v911_v42 }
  0xca   :  { %924 = vst [vmem:[#allocation3 + $0x13] sm:$0x1] %v919_v43  ;;  %v926_v45 = vld [vmem:[#allocation2 + $0x50] sm:$0x3]  ;;  %v934_v46 = vld [vmem:[#allocation2 + $0x60] sm:$0x3]  ;;  %v714_v47 = vpop.permute.xlu0 %713  ;;  %v720_v48 = vpop.permute.xlu1 %719 }
  0xcb   :  { %v927_v49 = vpack.c.bf16 %v1146_v50, %v926_v45  ;;  %v935_v51 = vpack.c.bf16 %v1146_v50, %v934_v46  ;;  %715 = vst [vmem:[#allocation2 + $0xf8] sm:$0xff] %v714_v47  ;;  %721 = vst [vmem:[#allocation2 + $0x28] sm:$0xff] %v720_v48 }
  0xcd   :  { %932 = vst [vmem:[#allocation3 + $0x14] sm:$0x1] %v927_v49  ;;  %940 = vst [vmem:[#allocation3 + $0x15] sm:$0x1] %v935_v51 }
  0xce   :  { %v942_v52 = vld [vmem:[#allocation2 + $0xd8] sm:$0x3]  ;;  %v950_v53 = vld [vmem:[#allocation2 + $0x30] sm:$0x3]  ;;  %v726_v54 = vpop.permute.xlu0 %725  ;;  %v732_v55 = vpop.permute.xlu1 %731 }
  0xcf   :  { %v943_v56 = vpack.c.bf16 %v1146_v50, %v942_v52  ;;  %v951_v57 = vpack.c.bf16 %v1146_v50, %v950_v53  ;;  %727 = vst [vmem:[#allocation2 + $0xb8] sm:$0xff] %v726_v54  ;;  %733 = vst [vmem:[#allocation2 + $0x68] sm:$0xff] %v732_v55 }
  0xd1   :  { %948 = vst [vmem:[#allocation3 + $0x16] sm:$0x1] %v943_v56  ;;  %956 = vst [vmem:[#allocation3 + $0x17] sm:$0x1] %v951_v57 }
  0xd2   :  { %v958_v58 = vld [vmem:[#allocation2 + $0xf8] sm:$0x3]  ;;  %v966_v59 = vld [vmem:[#allocation2 + $0x28] sm:$0x3]  ;;  %v738_v60 = vpop.permute.xlu0 %737  ;;  %v744_v61 = vpop.permute.xlu1 %743 }
  0xd3   :  { %v959_v62 = vpack.c.bf16 %v1146_v50, %v958_v58  ;;  %v967_v63 = vpack.c.bf16 %v1146_v50, %v966_v59  ;;  %739 = vst [vmem:[#allocation2 + $0x20] sm:$0xff] %v738_v60  ;;  %745 = vst [vmem:[#allocation2 + $0xc0] sm:$0xff] %v744_v61 }
  0xd5   :  { %964 = vst [vmem:[#allocation3 + $0x18] sm:$0x1] %v959_v62  ;;  %972 = vst [vmem:[#allocation3 + $0x19] sm:$0x1] %v967_v63 }
  0xd6   :  { %v974_v0 = vld [vmem:[#allocation2 + $0xb8] sm:$0x3]  ;;  %v982_v1 = vld [vmem:[#allocation2 + $0x68] sm:$0x3]  ;;  %v750_v2 = vpop.permute.xlu0 %749  ;;  %v756_v3 = vpop.permute.xlu1 %755 }
  0xd7   :  { %v975_v4 = vpack.c.bf16 %v1146_v50, %v974_v0  ;;  %v983_v5 = vpack.c.bf16 %v1146_v50, %v982_v1  ;;  %751 = vst [vmem:[#allocation2 + $0x88] sm:$0xff] %v750_v2  ;;  %757 = vst [vmem:[#allocation2 + $0x98] sm:$0xff] %v756_v3 }
  0xd8   :  { %v1047_v6 = vld [vmem:[#allocation3 + $0x10] sm:$0xff] }
  0xd9   :  { %1048 = vst [vmem:[%s1221_s1 + $0x10] sm:$0xff] %v1047_v6  ;;  %980 = vst [vmem:[#allocation3 + $0x1a] sm:$0x1] %v975_v4 }
  0xda   :  { %988 = vst [vmem:[#allocation3 + $0x1b] sm:$0x1] %v983_v5  ;;  %v990_v7 = vld [vmem:[#allocation2 + $0x20] sm:$0x3]  ;;  %v762_v9 = vpop.permute.xlu0 %761 }
  0xdb   :  { %v998_v8 = vld [vmem:[#allocation2 + $0xc0] sm:$0x3]  ;;  %v991_v10 = vpack.c.bf16 %v1146_v50, %v990_v7  ;;  %763 = vst [vmem:[#allocation2 + $0xa0] sm:$0xff] %v762_v9 }
  0xdc   :  { %v999_v11 = vpack.c.bf16 %v1146_v50, %v998_v8 }
  0xdd   :  { %996 = vst [vmem:[#allocation3 + $0x1c] sm:$0x1] %v991_v10 }
  0xde   :  { %1004 = vst [vmem:[#allocation3 + $0x1d] sm:$0x1] %v999_v11  ;;  %v1006_v12 = vld [vmem:[#allocation2 + $0x88] sm:$0x3]  ;;  %v1014_v13 = vld [vmem:[#allocation2 + $0x98] sm:$0x3] }
  0xdf   :  { %v1007_v14 = vpack.c.bf16 %v1146_v50, %v1006_v12  ;;  %v1015_v15 = vpack.c.bf16 %v1146_v50, %v1014_v13 }
  0xe1   :  { %1012 = vst [vmem:[#allocation3 + $0x1e] sm:$0x1] %v1007_v14  ;;  %1020 = vst [vmem:[#allocation3 + $0x1f] sm:$0x1] %v1015_v15 }
  0xe2   :  { %v1022_v16 = vld [vmem:[#allocation2 + $0xa0] sm:$0x3] }
  0xe3   :  { %v1023_v50 = vpack.c.bf16 %v1146_v50, %v1022_v16 }
  0xe5   :  { %1028 = vst [vmem:[#allocation3 + $0x20] sm:$0x1] %v1023_v50 }
  0xe8   :  { %v1049_v17 = vld [vmem:[#allocation3 + $0x18] sm:$0xff] }
  0xe9   :  { %1050 = vst [vmem:[%s1221_s1 + $0x18] sm:$0xff] %v1049_v17 }
  0xec   :  { %v1061_v18 = vld [vmem:[#allocation3 + $0x20] sm:$0x1] }
  0xed   :  { %1143 = vst [vmem:[%s1221_s1 + $0x20] sm:$0x1] %v1061_v18 }

// kernel: reverse.6
= control target key start
LH: loop header
LB: loop body
LE: loop exit
PB: predicated region body
PF: predicated region fallthrough
CT: control target
= control target key end

     0   :  { %v2_v0 = vlaneseq  ;;  %s1593_s0 = inlined_call_operand.vmem [shape: bf16[2,4,11,11], index: 0, kind: input, shape index: {}]   ;;  %s1594_s1 = inlined_call_operand.vmem [shape: bf16[2,4,11,11], index: 1, kind: output, shape index: {}]  }
   0x2   :  { %v3_v1 = vsub.s32 10, %v2_v0 }
   0x4   :  { %4 = vset.pattern.permute.xlu0 %v3_v1 }
   0x5   :  { %1501 = vset.pattern.permute.xlu1 %v3_v1  ;;  %v19_v2 = vld [vmem:[%s1593_s0] sm:$0xff]  ;;  %v21_v3 = vld [vmem:[%s1593_s0 + $0x8] sm:$0xff]  ;;  %v23_v4 = vld [vmem:[%s1593_s0 + $0x10] sm:$0xff] }
   0x6   :  { %20 = vst [vmem:[#allocation1] sm:$0xff] %v19_v2  ;;  %22 = vst [vmem:[#allocation1 + $0x8] sm:$0xff] %v21_v3  ;;  %v25_v5 = vld [vmem:[%s1593_s0 + $0x18] sm:$0xff]  ;;  %v27_v6 = vld [vmem:[%s1593_s0 + $0x20] sm:$0xff] }
   0x7   :  { %24 = vst [vmem:[#allocation1 + $0x10] sm:$0xff] %v23_v4  ;;  %v1498_v7 = vld [vmem:[%s1593_s0 + $0x28] sm:$0xf]  ;;  %26 = vst [vmem:[#allocation1 + $0x18] sm:$0xff] %v25_v5 }
   0x8   :  { %28 = vst [vmem:[#allocation1 + $0x20] sm:$0xff] %v27_v6  ;;  %40 = vst [vmem:[#allocation1 + $0x28] sm:$0xf] %v1498_v7 }
   0xd   :  { %v742_v8 = vld [vmem:[#allocation1] sm:$0x1]  ;;  %v713_v9 = vld [vmem:[#allocation1 + $0x2] sm:$0x1]  ;;  %v728_v10 = vld [vmem:[#allocation1 + $0x1] sm:$0x1] }
   0xe   :  { %v743_v11 = vunpack.c.l.bf16 %v742_v8  ;;  %v714_v12 = vunpack.c.l.bf16 %v713_v9  ;;  %v729_v13 = vunpack.c.l.bf16 %v728_v10  ;;  %v697_v14 = vld [vmem:[#allocation1 + $0x3] sm:$0x1]  ;;  %v681_v15 = vld [vmem:[#allocation1 + $0x4] sm:$0x1]  ;;  %v665_v16 = vld [vmem:[#allocation1 + $0x5] sm:$0x1] }
   0xf   :  { %v698_v17 = vunpack.c.l.bf16 %v697_v14  ;;  %v682_v18 = vunpack.c.l.bf16 %v681_v15  ;;  %v666_v19 = vunpack.c.l.bf16 %v665_v16  ;;  %v649_v20 = vld [vmem:[#allocation1 + $0x6] sm:$0x1]  ;;  %v633_v21 = vld [vmem:[#allocation1 + $0x7] sm:$0x1]  ;;  %v617_v22 = vld [vmem:[#allocation1 + $0x8] sm:$0x1] }
  0x10   :  { %745 = vst [vmem:[#allocation0 + $0x128] sm:$0x3] %v743_v11  ;;  %717 = vst [vmem:[#allocation0 + $0x18] sm:$0x3] %v714_v12  ;;  %v650_v23 = vunpack.c.l.bf16 %v649_v20  ;;  %v634_v24 = vunpack.c.l.bf16 %v633_v21  ;;  %v618_v25 = vunpack.c.l.bf16 %v617_v22  ;;  %v601_v26 = vld [vmem:[#allocation1 + $0x9] sm:$0x1] }
  0x11   :  { %732 = vst [vmem:[#allocation0 + $0x98] sm:$0x3] %v729_v13  ;;  %v585_v27 = vld [vmem:[#allocation1 + $0xa] sm:$0x1]  ;;  %v569_v28 = vld [vmem:[#allocation1 + $0xb] sm:$0x1]  ;;  %v602_v29 = vunpack.c.l.bf16 %v601_v26 }
  0x12   :  { %701 = vst [vmem:[#allocation0 + $0xf0] sm:$0x3] %v698_v17  ;;  %685 = vst [vmem:[#allocation0 + $0x118] sm:$0x3] %v682_v18  ;;  %v586_v30 = vunpack.c.l.bf16 %v585_v27  ;;  %v570_v31 = vunpack.c.l.bf16 %v569_v28  ;;  %v553_v32 = vld [vmem:[#allocation1 + $0xc] sm:$0x1] }
  0x13   :  { %669 = vst [vmem:[#allocation0 + $0x130] sm:$0x3] %v666_v19  ;;  %v537_v33 = vld [vmem:[#allocation1 + $0xd] sm:$0x1]  ;;  %v521_v34 = vld [vmem:[#allocation1 + $0xe] sm:$0x1]  ;;  %v554_v35 = vunpack.c.l.bf16 %v553_v32 }
  0x14   :  { %653 = vst [vmem:[#allocation0 + $0x10] sm:$0x3] %v650_v23  ;;  %637 = vst [vmem:[#allocation0 + $0x100] sm:$0x3] %v634_v24  ;;  %v538_v36 = vunpack.c.l.bf16 %v537_v33  ;;  %v522_v37 = vunpack.c.l.bf16 %v521_v34  ;;  %v505_v38 = vld [vmem:[#allocation1 + $0xf] sm:$0x1] }
  0x15   :  { %621 = vst [vmem:[#allocation0 + $0xf8] sm:$0x3] %v618_v25  ;;  %v489_v39 = vld [vmem:[#allocation1 + $0x10] sm:$0x1]  ;;  %v473_v40 = vld [vmem:[#allocation1 + $0x11] sm:$0x1]  ;;  %v506_v41 = vunpack.c.l.bf16 %v505_v38 }
  0x16   :  { %605 = vst [vmem:[#allocation0 + $0xd0] sm:$0x3] %v602_v29  ;;  %589 = vst [vmem:[#allocation0 + $0xb8] sm:$0x3] %v586_v30  ;;  %v490_v42 = vunpack.c.l.bf16 %v489_v39  ;;  %v474_v43 = vunpack.c.l.bf16 %v473_v40  ;;  %v457_v44 = vld [vmem:[#allocation1 + $0x12] sm:$0x1] }
  0x17   :  { %573 = vst [vmem:[#allocation0 + $0x78] sm:$0x3] %v570_v31  ;;  %v441_v45 = vld [vmem:[#allocation1 + $0x13] sm:$0x1]  ;;  %v425_v46 = vld [vmem:[#allocation1 + $0x14] sm:$0x1]  ;;  %v458_v47 = vunpack.c.l.bf16 %v457_v44 }
  0x18   :  { %557 = vst [vmem:[#allocation0 + $0xa0] sm:$0x3] %v554_v35  ;;  %541 = vst [vmem:[#allocation0 + $0x108] sm:$0x3] %v538_v36  ;;  %v442_v48 = vunpack.c.l.bf16 %v441_v45  ;;  %v426_v49 = vunpack.c.l.bf16 %v425_v46  ;;  %v409_v50 = vld [vmem:[#allocation1 + $0x15] sm:$0x1] }
  0x19   :  { %525 = vst [vmem:[#allocation0 + $0x28] sm:$0x3] %v522_v37  ;;  %v393_v51 = vld [vmem:[#allocation1 + $0x16] sm:$0x1]  ;;  %v377_v52 = vld [vmem:[#allocation1 + $0x17] sm:$0x1]  ;;  %v410_v53 = vunpack.c.l.bf16 %v409_v50 }
  0x1a   :  { %509 = vst [vmem:[#allocation0 + $0x40] sm:$0x3] %v506_v41  ;;  %493 = vst [vmem:[#allocation0 + $0x158] sm:$0x3] %v490_v42  ;;  %v394_v54 = vunpack.c.l.bf16 %v393_v51  ;;  %v378_v55 = vunpack.c.l.bf16 %v377_v52  ;;  %v361_v56 = vld [vmem:[#allocation1 + $0x18] sm:$0x1] }
  0x1b   :  { %477 = vst [vmem:[#allocation0 + $0xc8] sm:$0x3] %v474_v43  ;;  %v345_v57 = vld [vmem:[#allocation1 + $0x19] sm:$0x1]  ;;  %v329_v58 = vld [vmem:[#allocation1 + $0x1a] sm:$0x1]  ;;  %v362_v59 = vunpack.c.l.bf16 %v361_v56 }
  0x1c   :  { %461 = vst [vmem:[#allocation0 + $0xe0] sm:$0x3] %v458_v47  ;;  %445 = vst [vmem:[#allocation0 + $0x8] sm:$0x3] %v442_v48  ;;  %v346_v60 = vunpack.c.l.bf16 %v345_v57  ;;  %v330_v61 = vunpack.c.l.bf16 %v329_v58  ;;  %v313_v62 = vld [vmem:[#allocation1 + $0x1b] sm:$0x1] }
  0x1d   :  { %429 = vst [vmem:[#allocation0 + $0x70] sm:$0x3] %v426_v49  ;;  %v297_v63 = vld [vmem:[#allocation1 + $0x1c] sm:$0x1]  ;;  %v281_v0 = vld [vmem:[#allocation1 + $0x1d] sm:$0x1]  ;;  %v314_v3 = vunpack.c.l.bf16 %v313_v62 }
  0x1e   :  { %v746_v1 = vld [vmem:[#allocation0 + $0x128] sm:$0xff]  ;;  %v758_v2 = vld [vmem:[#allocation0 + $0x18] sm:$0xff]  ;;  %413 = vst [vmem:[#allocation0 + $0x80] sm:$0x3] %v410_v53  ;;  %397 = vst [vmem:[#allocation0] sm:$0x3] %v394_v54  ;;  %v298_v4 = vunpack.c.l.bf16 %v297_v63  ;;  %v282_v5 = vunpack.c.l.bf16 %v281_v0 }
  0x1f   :  { %381 = vst [vmem:[#allocation0 + $0xb0] sm:$0x3] %v378_v55  ;;  %747 = vperm.xlu0 %4, %v746_v1   ;;  %759 = vperm.xlu1 %1501, %v758_v2   ;;  %365 = vst [vmem:[#allocation0 + $0xc0] sm:$0x3] %v362_v59  ;;  %v752_v6 = vld [vmem:[#allocation0 + $0x98] sm:$0xff]  ;;  %v764_v7 = vld [vmem:[#allocation0 + $0xf0] sm:$0xff] }
  0x20   :  { %349 = vst [vmem:[#allocation0 + $0x150] sm:$0x3] %v346_v60  ;;  %333 = vst [vmem:[#allocation0 + $0x48] sm:$0x3] %v330_v61  ;;  %v770_v8 = vld [vmem:[#allocation0 + $0x118] sm:$0xff]  ;;  %v776_v9 = vld [vmem:[#allocation0 + $0x130] sm:$0xff] }
  0x21   :  { %317 = vst [vmem:[#allocation0 + $0x30] sm:$0x3] %v314_v3  ;;  %301 = vst [vmem:[#allocation0 + $0x138] sm:$0x3] %v298_v4  ;;  %v782_v10 = vld [vmem:[#allocation0 + $0x10] sm:$0xff]  ;;  %v788_v11 = vld [vmem:[#allocation0 + $0x100] sm:$0xff] }
  0x22   :  { %285 = vst [vmem:[#allocation0 + $0xe8] sm:$0x3] %v282_v5  ;;  %v265_v12 = vld [vmem:[#allocation1 + $0x1e] sm:$0x1]  ;;  %v249_v13 = vld [vmem:[#allocation1 + $0x1f] sm:$0x1] }
  0x23   :  { %753 = vperm.xlu0 %4, %v752_v6   ;;  %765 = vperm.xlu1 %1501, %v764_v7   ;;  %v233_v14 = vld [vmem:[#allocation1 + $0x20] sm:$0x1]  ;;  %v266_v15 = vunpack.c.l.bf16 %v265_v12  ;;  %v250_v16 = vunpack.c.l.bf16 %v249_v13  ;;  %v217_v18 = vld [vmem:[#allocation1 + $0x21] sm:$0x1]  ;;  %v201_v19 = vld [vmem:[#allocation1 + $0x22] sm:$0x1] }
  0x24   :  { %v234_v17 = vunpack.c.l.bf16 %v233_v14  ;;  %v185_v20 = vld [vmem:[#allocation1 + $0x23] sm:$0x1]  ;;  %v794_v21 = vld [vmem:[#allocation0 + $0xf8] sm:$0xff]  ;;  %v218_v22 = vunpack.c.l.bf16 %v217_v18  ;;  %v202_v23 = vunpack.c.l.bf16 %v201_v19  ;;  %v169_v25 = vld [vmem:[#allocation1 + $0x24] sm:$0x1] }
  0x25   :  { %v186_v24 = vunpack.c.l.bf16 %v185_v20  ;;  %v153_v26 = vld [vmem:[#allocation1 + $0x25] sm:$0x1]  ;;  %v137_v27 = vld [vmem:[#allocation1 + $0x26] sm:$0x1]  ;;  %269 = vst [vmem:[#allocation0 + $0x90] sm:$0x3] %v266_v15  ;;  %v170_v28 = vunpack.c.l.bf16 %v169_v25 }
  0x26   :  { %253 = vst [vmem:[#allocation0 + $0x140] sm:$0x3] %v250_v16  ;;  %237 = vst [vmem:[#allocation0 + $0x68] sm:$0x3] %v234_v17  ;;  %v154_v29 = vunpack.c.l.bf16 %v153_v26  ;;  %v138_v30 = vunpack.c.l.bf16 %v137_v27  ;;  %v121_v31 = vld [vmem:[#allocation1 + $0x27] sm:$0x1] }
  0x27   :  { %771 = vperm.xlu0 %4, %v770_v8   ;;  %777 = vperm.xlu1 %1501, %v776_v9   ;;  %v105_v32 = vld [vmem:[#allocation1 + $0x28] sm:$0x1]  ;;  %v89_v33 = vld [vmem:[#allocation1 + $0x29] sm:$0x1]  ;;  %v800_v34 = vld [vmem:[#allocation0 + $0xd0] sm:$0xff]  ;;  %v122_v35 = vunpack.c.l.bf16 %v121_v31  ;;  %v1502_v20 = vmov 0.0  }
  0x28   :  { %221 = vst [vmem:[#allocation0 + $0x20] sm:$0x3] %v218_v22  ;;  %205 = vst [vmem:[#allocation0 + $0x50] sm:$0x3] %v202_v23  ;;  %v106_v36 = vunpack.c.l.bf16 %v105_v32  ;;  %v90_v37 = vunpack.c.l.bf16 %v89_v33  ;;  %v73_v38 = vld [vmem:[#allocation1 + $0x2a] sm:$0x1] }
  0x29   :  { %189 = vst [vmem:[#allocation0 + $0xd8] sm:$0x3] %v186_v24  ;;  %v57_v39 = vld [vmem:[#allocation1 + $0x2b] sm:$0x1]  ;;  %173 = vst [vmem:[#allocation0 + $0x58] sm:$0x3] %v170_v28  ;;  %v74_v40 = vunpack.c.l.bf16 %v73_v38 }
  0x2a   :  { %157 = vst [vmem:[#allocation0 + $0x60] sm:$0x3] %v154_v29  ;;  %141 = vst [vmem:[#allocation0 + $0x120] sm:$0x3] %v138_v30  ;;  %v58_v41 = vunpack.c.l.bf16 %v57_v39  ;;  %v806_v42 = vld [vmem:[#allocation0 + $0xb8] sm:$0xff]  ;;  %v818_v44 = vld [vmem:[#allocation0 + $0xa0] sm:$0xff] }
  0x2b   :  { %783 = vperm.xlu0 %4, %v782_v10   ;;  %789 = vperm.xlu1 %1501, %v788_v11   ;;  %125 = vst [vmem:[#allocation0 + $0x38] sm:$0x3] %v122_v35  ;;  %109 = vst [vmem:[#allocation0 + $0x110] sm:$0x3] %v106_v36  ;;  %v812_v43 = vld [vmem:[#allocation0 + $0x78] sm:$0xff]  ;;  %v824_v45 = vld [vmem:[#allocation0 + $0x108] sm:$0xff] }
  0x2c   :  { %93 = vst [vmem:[#allocation0 + $0x148] sm:$0x3] %v90_v37  ;;  %77 = vst [vmem:[#allocation0 + $0x88] sm:$0x3] %v74_v40  ;;  %v830_v46 = vld [vmem:[#allocation0 + $0x28] sm:$0xff]  ;;  %v836_v47 = vld [vmem:[#allocation0 + $0x40] sm:$0xff] }
  0x2d   :  { %61 = vst [vmem:[#allocation0 + $0xa8] sm:$0x3] %v58_v41  ;;  %v842_v48 = vld [vmem:[#allocation0 + $0x158] sm:$0xff]  ;;  %v848_v49 = vld [vmem:[#allocation0 + $0xc8] sm:$0xff]  ;;  %v854_v50 = vld [vmem:[#allocation0 + $0xe0] sm:$0xff] }
  0x2e   :  { %v860_v51 = vld [vmem:[#allocation0 + $0x8] sm:$0xff]  ;;  %v866_v52 = vld [vmem:[#allocation0 + $0x70] sm:$0xff]  ;;  %v872_v53 = vld [vmem:[#allocation0 + $0x80] sm:$0xff] }
  0x2f   :  { %795 = vperm.xlu0 %4, %v794_v21   ;;  %801 = vperm.xlu1 %1501, %v800_v34   ;;  %v878_v54 = vld [vmem:[#allocation0] sm:$0xff]  ;;  %v884_v55 = vld [vmem:[#allocation0 + $0xb0] sm:$0xff]  ;;  %v902_v58 = vld [vmem:[#allocation0 + $0x48] sm:$0xff] }
  0x30   :  { %v890_v56 = vld [vmem:[#allocation0 + $0xc0] sm:$0xff]  ;;  %v896_v57 = vld [vmem:[#allocation0 + $0x150] sm:$0xff]  ;;  %v914_v60 = vld [vmem:[#allocation0 + $0x138] sm:$0xff] }
  0x31   :  { %v908_v59 = vld [vmem:[#allocation0 + $0x30] sm:$0xff]  ;;  %v920_v61 = vld [vmem:[#allocation0 + $0xe8] sm:$0xff]  ;;  %v932_v63 = vld [vmem:[#allocation0 + $0x140] sm:$0xff] }
  0x32   :  { %v926_v62 = vld [vmem:[#allocation0 + $0x90] sm:$0xff]  ;;  %v938_v0 = vld [vmem:[#allocation0 + $0x68] sm:$0xff]  ;;  %v944_v1 = vld [vmem:[#allocation0 + $0x20] sm:$0xff] }
  0x33   :  { %807 = vperm.xlu0 %4, %v806_v42   ;;  %813 = vperm.xlu1 %1501, %v812_v43   ;;  %v950_v2 = vld [vmem:[#allocation0 + $0x50] sm:$0xff]  ;;  %v956_v3 = vld [vmem:[#allocation0 + $0xd8] sm:$0xff]  ;;  %v968_v5 = vld [vmem:[#allocation0 + $0x60] sm:$0xff] }
  0x34   :  { %v962_v4 = vld [vmem:[#allocation0 + $0x58] sm:$0xff]  ;;  %v974_v6 = vld [vmem:[#allocation0 + $0x120] sm:$0xff]  ;;  %v986_v8 = vld [vmem:[#allocation0 + $0x110] sm:$0xff] }
  0x35   :  { %v980_v7 = vld [vmem:[#allocation0 + $0x38] sm:$0xff]  ;;  %v992_v9 = vld [vmem:[#allocation0 + $0x148] sm:$0xff] }
  0x36   :  { %v998_v10 = vld [vmem:[#allocation0 + $0x88] sm:$0xff] }
  0x37   :  { %819 = vperm.xlu0 %4, %v818_v44   ;;  %825 = vperm.xlu1 %1501, %v824_v45   ;;  %v1004_v11 = vld [vmem:[#allocation0 + $0xa8] sm:$0xff] }
  0x3b   :  { %831 = vperm.xlu0 %4, %v830_v46   ;;  %837 = vperm.xlu1 %1501, %v836_v47  }
  0x3f   :  { %843 = vperm.xlu0 %4, %v842_v48   ;;  %849 = vperm.xlu1 %1501, %v848_v49  }
  0x43   :  { %855 = vperm.xlu0 %4, %v854_v50   ;;  %861 = vperm.xlu1 %1501, %v860_v51  }
  0x47   :  { %867 = vperm.xlu0 %4, %v866_v52   ;;  %873 = vperm.xlu1 %1501, %v872_v53  }
  0x4b   :  { %879 = vperm.xlu0 %4, %v878_v54   ;;  %885 = vperm.xlu1 %1501, %v884_v55  }
  0x4f   :  { %891 = vperm.xlu0 %4, %v890_v56   ;;  %897 = vperm.xlu1 %1501, %v896_v57  }
  0x53   :  { %903 = vperm.xlu0 %4, %v902_v58   ;;  %909 = vperm.xlu1 %1501, %v908_v59  }
  0x57   :  { %915 = vperm.xlu0 %4, %v914_v60   ;;  %921 = vperm.xlu1 %1501, %v920_v61  }
  0x5b   :  { %927 = vperm.xlu0 %4, %v926_v62   ;;  %933 = vperm.xlu1 %1501, %v932_v63  }
  0x5f   :  { %939 = vperm.xlu0 %4, %v938_v0   ;;  %945 = vperm.xlu1 %1501, %v944_v1  }
  0x63   :  { %951 = vperm.xlu0 %4, %v950_v2   ;;  %957 = vperm.xlu1 %1501, %v956_v3  }
  0x67   :  { %963 = vperm.xlu0 %4, %v962_v4   ;;  %969 = vperm.xlu1 %1501, %v968_v5  }
  0x6b   :  { %975 = vperm.xlu0 %4, %v974_v6   ;;  %981 = vperm.xlu1 %1501, %v980_v7  }
  0x6f   :  { %987 = vperm.xlu0 %4, %v986_v8   ;;  %993 = vperm.xlu1 %1501, %v992_v9  }
  0x73   :  { %999 = vperm.xlu0 %4, %v998_v10   ;;  %1005 = vperm.xlu1 %1501, %v1004_v11  }
  0x9a   :  { %v748_v12 = vpop.permute.xlu0 %747  ;;  %v760_v13 = vpop.permute.xlu1 %759 }
  0x9b   :  { %749 = vst [vmem:[#allocation2 + $0xb0] sm:$0xff] %v748_v12  ;;  %761 = vst [vmem:[#allocation2 + $0x88] sm:$0xff] %v760_v13 }
  0x9e   :  { %v754_v14 = vpop.permute.xlu0 %753  ;;  %v766_v15 = vpop.permute.xlu1 %765 }
  0x9f   :  { %755 = vst [vmem:[#allocation2 + $0xc0] sm:$0xff] %v754_v14  ;;  %767 = vst [vmem:[#allocation2 + $0x108] sm:$0xff] %v766_v15 }
  0xa2   :  { %v1013_v16 = vld [vmem:[#allocation2 + $0xb0] sm:$0x3]  ;;  %v1026_v17 = vld [vmem:[#allocation2 + $0x88] sm:$0x3]  ;;  %v772_v18 = vpop.permute.xlu0 %771  ;;  %v778_v19 = vpop.permute.xlu1 %777 }
  0xa3   :  { %v1014_v21 = vpack.c.bf16 %v1502_v20, %v1013_v16  ;;  %v1027_v22 = vpack.c.bf16 %v1502_v20, %v1026_v17  ;;  %773 = vst [vmem:[#allocation2 + $0x28] sm:$0xff] %v772_v18  ;;  %779 = vst [vmem:[#allocation2 + $0x90] sm:$0xff] %v778_v19 }
  0xa5   :  { %1017 = vst [vmem:[#allocation3] sm:$0x1] %v1014_v21  ;;  %1032 = vst [vmem:[#allocation3 + $0x2] sm:$0x1] %v1027_v22 }
  0xa6   :  { %v1019_v23 = vld [vmem:[#allocation2 + $0xc0] sm:$0x3]  ;;  %v1034_v24 = vld [vmem:[#allocation2 + $0x108] sm:$0x3]  ;;  %v784_v25 = vpop.permute.xlu0 %783  ;;  %v790_v26 = vpop.permute.xlu1 %789 }
  0xa7   :  { %v1020_v27 = vpack.c.bf16 %v1502_v20, %v1019_v23  ;;  %v1035_v28 = vpack.c.bf16 %v1502_v20, %v1034_v24  ;;  %785 = vst [vmem:[#allocation2 + $0x118] sm:$0xff] %v784_v25  ;;  %791 = vst [vmem:[#allocation2 + $0x150] sm:$0xff] %v790_v26 }
  0xa9   :  { %1024 = vst [vmem:[#allocation3 + $0x1] sm:$0x1] %v1020_v27  ;;  %1040 = vst [vmem:[#allocation3 + $0x3] sm:$0x1] %v1035_v28 }
  0xaa   :  { %v1042_v29 = vld [vmem:[#allocation2 + $0x28] sm:$0x3]  ;;  %v1050_v30 = vld [vmem:[#allocation2 + $0x90] sm:$0x3]  ;;  %v796_v31 = vpop.permute.xlu0 %795  ;;  %v802_v32 = vpop.permute.xlu1 %801 }
  0xab   :  { %v1043_v33 = vpack.c.bf16 %v1502_v20, %v1042_v29  ;;  %v1051_v34 = vpack.c.bf16 %v1502_v20, %v1050_v30  ;;  %797 = vst [vmem:[#allocation2 + $0xc8] sm:$0xff] %v796_v31  ;;  %803 = vst [vmem:[#allocation2] sm:$0xff] %v802_v32 }
  0xad   :  { %1048 = vst [vmem:[#allocation3 + $0x4] sm:$0x1] %v1043_v33  ;;  %1056 = vst [vmem:[#allocation3 + $0x5] sm:$0x1] %v1051_v34 }
  0xae   :  { %v1058_v35 = vld [vmem:[#allocation2 + $0x118] sm:$0x3]  ;;  %v1066_v36 = vld [vmem:[#allocation2 + $0x150] sm:$0x3]  ;;  %v808_v37 = vpop.permute.xlu0 %807  ;;  %v814_v38 = vpop.permute.xlu1 %813 }
  0xaf   :  { %v1059_v39 = vpack.c.bf16 %v1502_v20, %v1058_v35  ;;  %v1067_v40 = vpack.c.bf16 %v1502_v20, %v1066_v36  ;;  %809 = vst [vmem:[#allocation2 + $0xa8] sm:$0xff] %v808_v37  ;;  %815 = vst [vmem:[#allocation2 + $0xf8] sm:$0xff] %v814_v38 }
  0xb1   :  { %1064 = vst [vmem:[#allocation3 + $0x6] sm:$0x1] %v1059_v39  ;;  %1072 = vst [vmem:[#allocation3 + $0x7] sm:$0x1] %v1067_v40 }
  0xb2   :  { %v1074_v41 = vld [vmem:[#allocation2 + $0xc8] sm:$0x3]  ;;  %v1082_v42 = vld [vmem:[#allocation2] sm:$0x3]  ;;  %v820_v43 = vpop.permute.xlu0 %819  ;;  %v826_v44 = vpop.permute.xlu1 %825 }
  0xb3   :  { %v1075_v45 = vpack.c.bf16 %v1502_v20, %v1074_v41  ;;  %v1083_v46 = vpack.c.bf16 %v1502_v20, %v1082_v42  ;;  %821 = vst [vmem:[#allocation2 + $0xe0] sm:$0xff] %v820_v43  ;;  %827 = vst [vmem:[#allocation2 + $0xd0] sm:$0xff] %v826_v44 }
  0xb5   :  { %1080 = vst [vmem:[#allocation3 + $0x8] sm:$0x1] %v1075_v45  ;;  %1088 = vst [vmem:[#allocation3 + $0x9] sm:$0x1] %v1083_v46 }
  0xb6   :  { %v1090_v47 = vld [vmem:[#allocation2 + $0xa8] sm:$0x3]  ;;  %v1098_v48 = vld [vmem:[#allocation2 + $0xf8] sm:$0x3]  ;;  %v832_v49 = vpop.permute.xlu0 %831  ;;  %v838_v50 = vpop.permute.xlu1 %837 }
  0xb7   :  { %v1091_v51 = vpack.c.bf16 %v1502_v20, %v1090_v47  ;;  %v1099_v52 = vpack.c.bf16 %v1502_v20, %v1098_v48  ;;  %833 = vst [vmem:[#allocation2 + $0xb8] sm:$0xff] %v832_v49  ;;  %839 = vst [vmem:[#allocation2 + $0xd8] sm:$0xff] %v838_v50 }
  0xb8   :  { %v1375_v53 = vld [vmem:[#allocation3] sm:$0xff] }
  0xb9   :  { %1376 = vst [vmem:[%s1594_s1] sm:$0xff] %v1375_v53  ;;  %1096 = vst [vmem:[#allocation3 + $0xa] sm:$0x1] %v1091_v51 }
  0xba   :  { %1104 = vst [vmem:[#allocation3 + $0xb] sm:$0x1] %v1099_v52  ;;  %v1106_v54 = vld [vmem:[#allocation2 + $0xe0] sm:$0x3]  ;;  %v1114_v55 = vld [vmem:[#allocation2 + $0xd0] sm:$0x3]  ;;  %v844_v56 = vpop.permute.xlu0 %843  ;;  %v850_v57 = vpop.permute.xlu1 %849 }
  0xbb   :  { %v1107_v58 = vpack.c.bf16 %v1502_v20, %v1106_v54  ;;  %v1115_v59 = vpack.c.bf16 %v1502_v20, %v1114_v55  ;;  %845 = vst [vmem:[#allocation2 + $0x40] sm:$0xff] %v844_v56  ;;  %851 = vst [vmem:[#allocation2 + $0x138] sm:$0xff] %v850_v57 }
  0xbd   :  { %1112 = vst [vmem:[#allocation3 + $0xc] sm:$0x1] %v1107_v58  ;;  %1120 = vst [vmem:[#allocation3 + $0xd] sm:$0x1] %v1115_v59 }
  0xbe   :  { %v1122_v60 = vld [vmem:[#allocation2 + $0xb8] sm:$0x3]  ;;  %v856_v62 = vpop.permute.xlu0 %855  ;;  %v862_v63 = vpop.permute.xlu1 %861 }
  0xbf   :  { %v1130_v61 = vld [vmem:[#allocation2 + $0xd8] sm:$0x3]  ;;  %v1123_v0 = vpack.c.bf16 %v1502_v20, %v1122_v60  ;;  %857 = vst [vmem:[#allocation2 + $0x140] sm:$0xff] %v856_v62  ;;  %863 = vst [vmem:[#allocation2 + $0x148] sm:$0xff] %v862_v63 }
  0xc0   :  { %v1131_v1 = vpack.c.bf16 %v1502_v20, %v1130_v61 }
  0xc1   :  { %1128 = vst [vmem:[#allocation3 + $0xe] sm:$0x1] %v1123_v0 }
  0xc2   :  { %1136 = vst [vmem:[#allocation3 + $0xf] sm:$0x1] %v1131_v1  ;;  %v1138_v2 = vld [vmem:[#allocation2 + $0x40] sm:$0x3]  ;;  %v1146_v3 = vld [vmem:[#allocation2 + $0x138] sm:$0x3]  ;;  %v868_v4 = vpop.permute.xlu0 %867  ;;  %v874_v5 = vpop.permute.xlu1 %873 }
  0xc3   :  { %v1139_v6 = vpack.c.bf16 %v1502_v20, %v1138_v2  ;;  %v1147_v7 = vpack.c.bf16 %v1502_v20, %v1146_v3  ;;  %869 = vst [vmem:[#allocation2 + $0x98] sm:$0xff] %v868_v4  ;;  %875 = vst [vmem:[#allocation2 + $0x48] sm:$0xff] %v874_v5 }
  0xc5   :  { %1144 = vst [vmem:[#allocation3 + $0x10] sm:$0x1] %v1139_v6  ;;  %1152 = vst [vmem:[#allocation3 + $0x11] sm:$0x1] %v1147_v7 }
  0xc6   :  { %v1154_v8 = vld [vmem:[#allocation2 + $0x140] sm:$0x3]  ;;  %v1162_v9 = vld [vmem:[#allocation2 + $0x148] sm:$0x3]  ;;  %v880_v10 = vpop.permute.xlu0 %879  ;;  %v886_v11 = vpop.permute.xlu1 %885 }
  0xc7   :  { %v1155_v12 = vpack.c.bf16 %v1502_v20, %v1154_v8  ;;  %v1163_v13 = vpack.c.bf16 %v1502_v20, %v1162_v9  ;;  %881 = vst [vmem:[#allocation2 + $0x70] sm:$0xff] %v880_v10  ;;  %887 = vst [vmem:[#allocation2 + $0x158] sm:$0xff] %v886_v11 }
  0xc9   :  { %v1377_v14 = vld [vmem:[#allocation3 + $0x8] sm:$0xff]  ;;  %1160 = vst [vmem:[#allocation3 + $0x12] sm:$0x1] %v1155_v12  ;;  %1168 = vst [vmem:[#allocation3 + $0x13] sm:$0x1] %v1163_v13 }
  0xca   :  { %1378 = vst [vmem:[%s1594_s1 + $0x8] sm:$0xff] %v1377_v14  ;;  %v1170_v15 = vld [vmem:[#allocation2 + $0x98] sm:$0x3]  ;;  %v1178_v16 = vld [vmem:[#allocation2 + $0x48] sm:$0x3]  ;;  %v892_v17 = vpop.permute.xlu0 %891  ;;  %v898_v18 = vpop.permute.xlu1 %897 }
  0xcb   :  { %v1171_v19 = vpack.c.bf16 %v1502_v20, %v1170_v15  ;;  %v1179_v21 = vpack.c.bf16 %v1502_v20, %v1178_v16  ;;  %893 = vst [vmem:[#allocation2 + $0xf0] sm:$0xff] %v892_v17  ;;  %899 = vst [vmem:[#allocation2 + $0x60] sm:$0xff] %v898_v18 }
  0xcd   :  { %1176 = vst [vmem:[#allocation3 + $0x14] sm:$0x1] %v1171_v19  ;;  %1184 = vst [vmem:[#allocation3 + $0x15] sm:$0x1] %v1179_v21 }
  0xce   :  { %v1186_v22 = vld [vmem:[#allocation2 + $0x70] sm:$0x3]  ;;  %v1194_v23 = vld [vmem:[#allocation2 + $0x158] sm:$0x3]  ;;  %v904_v24 = vpop.permute.xlu0 %903  ;;  %v910_v25 = vpop.permute.xlu1 %909 }
  0xcf   :  { %v1187_v26 = vpack.c.bf16 %v1502_v20, %v1186_v22  ;;  %v1195_v27 = vpack.c.bf16 %v1502_v20, %v1194_v23  ;;  %905 = vst [vmem:[#allocation2 + $0x10] sm:$0xff] %v904_v24  ;;  %911 = vst [vmem:[#allocation2 + $0x68] sm:$0xff] %v910_v25 }
  0xd1   :  { %1192 = vst [vmem:[#allocation3 + $0x16] sm:$0x1] %v1187_v26  ;;  %1200 = vst [vmem:[#allocation3 + $0x17] sm:$0x1] %v1195_v27 }
  0xd2   :  { %v1202_v28 = vld [vmem:[#allocation2 + $0xf0] sm:$0x3]  ;;  %v1210_v29 = vld [vmem:[#allocation2 + $0x60] sm:$0x3]  ;;  %v916_v30 = vpop.permute.xlu0 %915  ;;  %v922_v31 = vpop.permute.xlu1 %921 }
  0xd3   :  { %v1203_v32 = vpack.c.bf16 %v1502_v20, %v1202_v28  ;;  %v1211_v33 = vpack.c.bf16 %v1502_v20, %v1210_v29  ;;  %917 = vst [vmem:[#allocation2 + $0x80] sm:$0xff] %v916_v30  ;;  %923 = vst [vmem:[#allocation2 + $0x100] sm:$0xff] %v922_v31 }
  0xd5   :  { %1208 = vst [vmem:[#allocation3 + $0x18] sm:$0x1] %v1203_v32  ;;  %1216 = vst [vmem:[#allocation3 + $0x19] sm:$0x1] %v1211_v33 }
  0xd6   :  { %v1218_v34 = vld [vmem:[#allocation2 + $0x10] sm:$0x3]  ;;  %v1226_v35 = vld [vmem:[#allocation2 + $0x68] sm:$0x3]  ;;  %v928_v36 = vpop.permute.xlu0 %927  ;;  %v934_v37 = vpop.permute.xlu1 %933 }
  0xd7   :  { %v1219_v38 = vpack.c.bf16 %v1502_v20, %v1218_v34  ;;  %v1227_v39 = vpack.c.bf16 %v1502_v20, %v1226_v35  ;;  %929 = vst [vmem:[#allocation2 + $0x18] sm:$0xff] %v928_v36  ;;  %935 = vst [vmem:[#allocation2 + $0xe8] sm:$0xff] %v934_v37 }
  0xd8   :  { %v1379_v40 = vld [vmem:[#allocation3 + $0x10] sm:$0xff] }
  0xd9   :  { %1380 = vst [vmem:[%s1594_s1 + $0x10] sm:$0xff] %v1379_v40  ;;  %1224 = vst [vmem:[#allocation3 + $0x1a] sm:$0x1] %v1219_v38 }
  0xda   :  { %1232 = vst [vmem:[#allocation3 + $0x1b] sm:$0x1] %v1227_v39  ;;  %v1234_v41 = vld [vmem:[#allocation2 + $0x80] sm:$0x3]  ;;  %v940_v43 = vpop.permute.xlu0 %939  ;;  %v946_v44 = vpop.permute.xlu1 %945 }
  0xdb   :  { %v1242_v42 = vld [vmem:[#allocation2 + $0x100] sm:$0x3]  ;;  %v1235_v45 = vpack.c.bf16 %v1502_v20, %v1234_v41  ;;  %941 = vst [vmem:[#allocation2 + $0x120] sm:$0xff] %v940_v43  ;;  %947 = vst [vmem:[#allocation2 + $0x20] sm:$0xff] %v946_v44 }
  0xdc   :  { %v1243_v46 = vpack.c.bf16 %v1502_v20, %v1242_v42 }
  0xdd   :  { %1240 = vst [vmem:[#allocation3 + $0x1c] sm:$0x1] %v1235_v45 }
  0xde   :  { %1248 = vst [vmem:[#allocation3 + $0x1d] sm:$0x1] %v1243_v46  ;;  %v1250_v47 = vld [vmem:[#allocation2 + $0x18] sm:$0x3]  ;;  %v1258_v48 = vld [vmem:[#allocation2 + $0xe8] sm:$0x3]  ;;  %v952_v49 = vpop.permute.xlu0 %951  ;;  %v958_v50 = vpop.permute.xlu1 %957 }
  0xdf   :  { %v1251_v51 = vpack.c.bf16 %v1502_v20, %v1250_v47  ;;  %v1259_v52 = vpack.c.bf16 %v1502_v20, %v1258_v48  ;;  %953 = vst [vmem:[#allocation2 + $0x78] sm:$0xff] %v952_v49  ;;  %959 = vst [vmem:[#allocation2 + $0x8] sm:$0xff] %v958_v50 }
  0xe1   :  { %1256 = vst [vmem:[#allocation3 + $0x1e] sm:$0x1] %v1251_v51  ;;  %1264 = vst [vmem:[#allocation3 + $0x1f] sm:$0x1] %v1259_v52 }
  0xe2   :  { %v1266_v53 = vld [vmem:[#allocation2 + $0x120] sm:$0x3]  ;;  %v964_v55 = vpop.permute.xlu0 %963  ;;  %v970_v56 = vpop.permute.xlu1 %969 }
  0xe3   :  { %v1274_v54 = vld [vmem:[#allocation2 + $0x20] sm:$0x3]  ;;  %v1267_v57 = vpack.c.bf16 %v1502_v20, %v1266_v53  ;;  %965 = vst [vmem:[#allocation2 + $0xa0] sm:$0xff] %v964_v55  ;;  %971 = vst [vmem:[#allocation2 + $0x110] sm:$0xff] %v970_v56 }
  0xe4   :  { %v1275_v58 = vpack.c.bf16 %v1502_v20, %v1274_v54 }
  0xe5   :  { %1272 = vst [vmem:[#allocation3 + $0x20] sm:$0x1] %v1267_v57 }
  0xe6   :  { %1280 = vst [vmem:[#allocation3 + $0x21] sm:$0x1] %v1275_v58  ;;  %v1282_v59 = vld [vmem:[#allocation2 + $0x78] sm:$0x3]  ;;  %v1290_v60 = vld [vmem:[#allocation2 + $0x8] sm:$0x3]  ;;  %v976_v61 = vpop.permute.xlu0 %975  ;;  %v982_v62 = vpop.permute.xlu1 %981 }
  0xe7   :  { %v1283_v63 = vpack.c.bf16 %v1502_v20, %v1282_v59  ;;  %v1291_v0 = vpack.c.bf16 %v1502_v20, %v1290_v60  ;;  %977 = vst [vmem:[#allocation2 + $0x50] sm:$0xff] %v976_v61  ;;  %983 = vst [vmem:[#allocation2 + $0x30] sm:$0xff] %v982_v62 }
  0xe8   :  { %v1381_v1 = vld [vmem:[#allocation3 + $0x18] sm:$0xff] }
  0xe9   :  { %1382 = vst [vmem:[%s1594_s1 + $0x18] sm:$0xff] %v1381_v1  ;;  %1288 = vst [vmem:[#allocation3 + $0x22] sm:$0x1] %v1283_v63 }
  0xea   :  { %1296 = vst [vmem:[#allocation3 + $0x23] sm:$0x1] %v1291_v0  ;;  %v1298_v2 = vld [vmem:[#allocation2 + $0xa0] sm:$0x3]  ;;  %v1306_v3 = vld [vmem:[#allocation2 + $0x110] sm:$0x3]  ;;  %v988_v4 = vpop.permute.xlu0 %987  ;;  %v994_v5 = vpop.permute.xlu1 %993 }
  0xeb   :  { %v1299_v6 = vpack.c.bf16 %v1502_v20, %v1298_v2  ;;  %v1307_v7 = vpack.c.bf16 %v1502_v20, %v1306_v3  ;;  %989 = vst [vmem:[#allocation2 + $0x130] sm:$0xff] %v988_v4  ;;  %995 = vst [vmem:[#allocation2 + $0x58] sm:$0xff] %v994_v5 }
  0xed   :  { %1304 = vst [vmem:[#allocation3 + $0x24] sm:$0x1] %v1299_v6  ;;  %1312 = vst [vmem:[#allocation3 + $0x25] sm:$0x1] %v1307_v7 }
  0xee   :  { %v1314_v8 = vld [vmem:[#allocation2 + $0x50] sm:$0x3]  ;;  %v1000_v10 = vpop.permute.xlu0 %999  ;;  %v1006_v11 = vpop.permute.xlu1 %1005 }
  0xef   :  { %v1322_v9 = vld [vmem:[#allocation2 + $0x30] sm:$0x3]  ;;  %v1315_v12 = vpack.c.bf16 %v1502_v20, %v1314_v8  ;;  %1001 = vst [vmem:[#allocation2 + $0x38] sm:$0xff] %v1000_v10  ;;  %1007 = vst [vmem:[#allocation2 + $0x128] sm:$0xff] %v1006_v11 }
  0xf0   :  { %v1323_v13 = vpack.c.bf16 %v1502_v20, %v1322_v9 }
  0xf1   :  { %1320 = vst [vmem:[#allocation3 + $0x26] sm:$0x1] %v1315_v12 }
  0xf2   :  { %1328 = vst [vmem:[#allocation3 + $0x27] sm:$0x1] %v1323_v13  ;;  %v1330_v14 = vld [vmem:[#allocation2 + $0x130] sm:$0x3]  ;;  %v1338_v15 = vld [vmem:[#allocation2 + $0x58] sm:$0x3] }
  0xf3   :  { %v1331_v16 = vpack.c.bf16 %v1502_v20, %v1330_v14  ;;  %v1339_v17 = vpack.c.bf16 %v1502_v20, %v1338_v15 }
  0xf5   :  { %1336 = vst [vmem:[#allocation3 + $0x28] sm:$0x1] %v1331_v16  ;;  %1344 = vst [vmem:[#allocation3 + $0x29] sm:$0x1] %v1339_v17 }
  0xf6   :  { %v1346_v18 = vld [vmem:[#allocation2 + $0x38] sm:$0x3]  ;;  %v1354_v19 = vld [vmem:[#allocation2 + $0x128] sm:$0x3] }
  0xf7   :  { %v1347_v21 = vpack.c.bf16 %v1502_v20, %v1346_v18  ;;  %v1355_v20 = vpack.c.bf16 %v1502_v20, %v1354_v19 }
  0xf9   :  { %v1383_v22 = vld [vmem:[#allocation3 + $0x20] sm:$0xff]  ;;  %1352 = vst [vmem:[#allocation3 + $0x2a] sm:$0x1] %v1347_v21  ;;  %1360 = vst [vmem:[#allocation3 + $0x2b] sm:$0x1] %v1355_v20 }
  0xfa   :  { %1384 = vst [vmem:[%s1594_s1 + $0x20] sm:$0xff] %v1383_v22 }
 0x100   :  { %v1395_v23 = vld [vmem:[#allocation3 + $0x28] sm:$0xf] }
 0x101   :  { %1499 = vst [vmem:[%s1594_s1 + $0x28] sm:$0xf] %v1395_v23 }

// kernel: reverse
= control target key start
LH: loop header
LB: loop body
LE: loop exit
PB: predicated region body
PF: predicated region fallthrough
CT: control target
= control target key end

     0   :  { %v2_v0 = vlaneseq  ;;  %s907_s0 = inlined_call_operand.vmem [shape: bf16[2,4,16,16], index: 0, kind: input, shape index: {}]   ;;  %s908_s1 = inlined_call_operand.vmem [shape: bf16[2,4,16,16], index: 1, kind: output, shape index: {}]  }
   0x2   :  { %v3_v1 = vsub.s32 15, %v2_v0 }
   0x4   :  { %4 = vset.pattern.permute.xlu0 %v3_v1 }
   0x5   :  { %818 = vset.pattern.permute.xlu1 %v3_v1  ;;  %v29_v2 = vld [vmem:[%s907_s0 + $0x10] sm:$0xff]   ;;  %v21_v3 = vld [vmem:[%s907_s0] sm:$0xff]   ;;  %v33_v4 = vld [vmem:[%s907_s0 + $0x18] sm:$0xff]  }
   0x6   :  { %30 = vst [vmem:[#allocation1 + $0x10] sm:$0xff] %v29_v2   ;;  %22 = vst [vmem:[#allocation1] sm:$0xff] %v21_v3   ;;  %v25_v5 = vld [vmem:[%s907_s0 + $0x8] sm:$0xff]   ;;  %v37_v7 = vld [vmem:[%s907_s0 + $0x20] sm:$0xff]  }
   0x7   :  { %34 = vst [vmem:[#allocation1 + $0x18] sm:$0xff] %v33_v4   ;;  %v41_v6 = vld [vmem:[%s907_s0 + $0x28] sm:$0xff]   ;;  %26 = vst [vmem:[#allocation1 + $0x8] sm:$0xff] %v25_v5   ;;  %v49_v8 = vld [vmem:[%s907_s0 + $0x38] sm:$0xff]  }
   0x8   :  { %42 = vst [vmem:[#allocation1 + $0x28] sm:$0xff] %v41_v6   ;;  %38 = vst [vmem:[#allocation1 + $0x20] sm:$0xff] %v37_v7   ;;  %v45_v9 = vld [vmem:[%s907_s0 + $0x30] sm:$0xff]  }
   0x9   :  { %50 = vst [vmem:[#allocation1 + $0x38] sm:$0xff] %v49_v8   ;;  %46 = vst [vmem:[#allocation1 + $0x30] sm:$0xff] %v45_v9  }
   0xd   :  { %v757_v10 = vld [vmem:[#allocation1 + $0x10] sm:$0xff]   ;;  %v765_v11 = vld [vmem:[#allocation1] sm:$0xff]  }
   0xe   :  { %v753_v12 = vld [vmem:[#allocation1 + $0x18] sm:$0xff]   ;;  %v758_v13 = vunpack.c.l.bf16 %v757_v10  ;;  %v759_v14 = vunpack.c.h.bf16 %v757_v10  ;;  %v766_v15 = vunpack.c.l.bf16 %v765_v11  ;;  %v767_v16 = vunpack.c.h.bf16 %v765_v11  ;;  %v761_v17 = vld [vmem:[#allocation1 + $0x8] sm:$0xff]  }
   0xf   :  { %v745_v18 = vld [vmem:[#allocation1 + $0x28] sm:$0xff]   ;;  %v754_v19 = vunpack.c.l.bf16 %v753_v12  ;;  %v755_v20 = vunpack.c.h.bf16 %v753_v12  ;;  %v762_v21 = vunpack.c.l.bf16 %v761_v17  ;;  %v763_v22 = vunpack.c.h.bf16 %v761_v17  ;;  %v749_v23 = vld [vmem:[#allocation1 + $0x20] sm:$0xff]  }
  0x10   :  { %v819_v24 = vpack.i.bf16 %v759_v14, %v758_v13  ;;  %v808_v25 = vpack.i.bf16 %v767_v16, %v766_v15  ;;  %v746_v26 = vunpack.c.l.bf16 %v745_v18  ;;  %v747_v27 = vunpack.c.h.bf16 %v745_v18  ;;  %v737_v32 = vld [vmem:[#allocation1 + $0x38] sm:$0xff]   ;;  %v741_v33 = vld [vmem:[#allocation1 + $0x30] sm:$0xff]  }
  0x11   :  { %v824_v28 = vpack.i.bf16 %v755_v20, %v754_v19  ;;  %v813_v29 = vpack.i.bf16 %v763_v22, %v762_v21  ;;  %v750_v30 = vunpack.c.l.bf16 %v749_v23  ;;  %v751_v31 = vunpack.c.h.bf16 %v749_v23 }
  0x12   :  { %820 = vperm.xlu1 %818, %v819_v24   ;;  %809 = vperm.xlu0 %4, %v808_v25   ;;  %v834_v34 = vpack.i.bf16 %v747_v27, %v746_v26  ;;  %v738_v35 = vunpack.c.l.bf16 %v737_v32  ;;  %v739_v37 = vunpack.c.h.bf16 %v737_v32  ;;  %v742_v38 = vunpack.c.l.bf16 %v741_v33 }
  0x13   :  { %v829_v36 = vpack.i.bf16 %v751_v31, %v750_v30  ;;  %v743_v39 = vunpack.c.h.bf16 %v741_v33 }
  0x14   :  { %v844_v40 = vpack.i.bf16 %v739_v37, %v738_v35 }
  0x15   :  { %v839_v41 = vpack.i.bf16 %v743_v39, %v742_v38 }
  0x16   :  { %825 = vperm.xlu1 %818, %v824_v28   ;;  %814 = vperm.xlu0 %4, %v813_v29  }
  0x1a   :  { %835 = vperm.xlu1 %818, %v834_v34   ;;  %830 = vperm.xlu0 %4, %v829_v36  }
  0x1e   :  { %845 = vperm.xlu1 %818, %v844_v40   ;;  %840 = vperm.xlu0 %4, %v839_v41  }
  0x8d   :  { %v821_v42 = vpop.permute.xlu1 %820  ;;  %v810_v43 = vpop.permute.xlu0 %809 }
  0x8e   :  { %v823_v44 = vunpack.i.h.bf16 %v821_v42  ;;  %v822_v45 = vunpack.i.l.bf16 %v821_v42  ;;  %v812_v46 = vunpack.i.h.bf16 %v810_v43  ;;  %v811_v47 = vunpack.i.l.bf16 %v810_v43 }
  0x90   :  { %v781_v48 = vpack.c.bf16 %v823_v44, %v822_v45  ;;  %v771_v49 = vpack.c.bf16 %v812_v46, %v811_v47 }
  0x91   :  { %v826_v50 = vpop.permute.xlu1 %825  ;;  %v815_v51 = vpop.permute.xlu0 %814 }
  0x92   :  { %782 = vst [vmem:[#allocation3 + $0x10] sm:$0xff] %v781_v48   ;;  %772 = vst [vmem:[#allocation3] sm:$0xff] %v771_v49   ;;  %v828_v52 = vunpack.i.h.bf16 %v826_v50  ;;  %v827_v53 = vunpack.i.l.bf16 %v826_v50  ;;  %v817_v54 = vunpack.i.h.bf16 %v815_v51  ;;  %v816_v55 = vunpack.i.l.bf16 %v815_v51 }
  0x94   :  { %v786_v56 = vpack.c.bf16 %v828_v52, %v827_v53  ;;  %v776_v57 = vpack.c.bf16 %v817_v54, %v816_v55 }
  0x95   :  { %v836_v58 = vpop.permute.xlu1 %835  ;;  %v831_v59 = vpop.permute.xlu0 %830 }
  0x96   :  { %787 = vst [vmem:[#allocation3 + $0x18] sm:$0xff] %v786_v56   ;;  %777 = vst [vmem:[#allocation3 + $0x8] sm:$0xff] %v776_v57   ;;  %v838_v60 = vunpack.i.h.bf16 %v836_v58  ;;  %v837_v61 = vunpack.i.l.bf16 %v836_v58  ;;  %v833_v62 = vunpack.i.h.bf16 %v831_v59  ;;  %v832_v63 = vunpack.i.l.bf16 %v831_v59 }
  0x98   :  { %v796_v0 = vpack.c.bf16 %v838_v60, %v837_v61  ;;  %v791_v1 = vpack.c.bf16 %v833_v62, %v832_v63 }
  0x99   :  { %v609_v2 = vld [vmem:[#allocation3 + $0x10] sm:$0xff]   ;;  %v601_v3 = vld [vmem:[#allocation3] sm:$0xff]   ;;  %v846_v4 = vpop.permute.xlu1 %845  ;;  %v841_v5 = vpop.permute.xlu0 %840 }
  0x9a   :  { %610 = vst [vmem:[%s908_s1 + $0x10] sm:$0xff] %v609_v2   ;;  %602 = vst [vmem:[%s908_s1] sm:$0xff] %v601_v3   ;;  %v848_v6 = vunpack.i.h.bf16 %v846_v4  ;;  %v847_v7 = vunpack.i.l.bf16 %v846_v4  ;;  %v843_v8 = vunpack.i.h.bf16 %v841_v5  ;;  %v842_v9 = vunpack.i.l.bf16 %v841_v5 }
  0x9b   :  { %797 = vst [vmem:[#allocation3 + $0x28] sm:$0xff] %v796_v0   ;;  %792 = vst [vmem:[#allocation3 + $0x20] sm:$0xff] %v791_v1  }
  0x9c   :  { %v806_v10 = vpack.c.bf16 %v848_v6, %v847_v7  ;;  %v801_v11 = vpack.c.bf16 %v843_v8, %v842_v9 }
  0x9d   :  { %v613_v12 = vld [vmem:[#allocation3 + $0x18] sm:$0xff]   ;;  %v605_v13 = vld [vmem:[#allocation3 + $0x8] sm:$0xff]  }
  0x9e   :  { %614 = vst [vmem:[%s908_s1 + $0x18] sm:$0xff] %v613_v12   ;;  %606 = vst [vmem:[%s908_s1 + $0x8] sm:$0xff] %v605_v13  }
  0x9f   :  { %807 = vst [vmem:[#allocation3 + $0x38] sm:$0xff] %v806_v10   ;;  %802 = vst [vmem:[#allocation3 + $0x30] sm:$0xff] %v801_v11  }
  0xa2   :  { %v621_v14 = vld [vmem:[#allocation3 + $0x28] sm:$0xff]   ;;  %v617_v15 = vld [vmem:[#allocation3 + $0x20] sm:$0xff]  }
  0xa3   :  { %622 = vst [vmem:[%s908_s1 + $0x28] sm:$0xff] %v621_v14   ;;  %618 = vst [vmem:[%s908_s1 + $0x20] sm:$0xff] %v617_v15  }
  0xa6   :  { %v629_v16 = vld [vmem:[#allocation3 + $0x38] sm:$0xff]   ;;  %v625_v17 = vld [vmem:[#allocation3 + $0x30] sm:$0xff]  }
  0xa7   :  { %630 = vst [vmem:[%s908_s1 + $0x38] sm:$0xff] %v629_v16   ;;  %626 = vst [vmem:[%s908_s1 + $0x30] sm:$0xff] %v625_v17  }

// kernel: reverse.2
= control target key start
LH: loop header
LB: loop body
LE: loop exit
PB: predicated region body
PF: predicated region fallthrough
CT: control target
= control target key end

     0   :  { %v2_v0 = vlaneseq  ;;  %s703_s0 = inlined_call_operand.vmem [shape: bf16[2,3,16,16], index: 0, kind: input, shape index: {}]   ;;  %s704_s1 = inlined_call_operand.vmem [shape: bf16[2,3,16,16], index: 1, kind: output, shape index: {}]  }
   0x2   :  { %v3_v1 = vsub.s32 15, %v2_v0 }
   0x4   :  { %4 = vset.pattern.permute.xlu0 %v3_v1 }
   0x5   :  { %636 = vset.pattern.permute.xlu1 %v3_v1  ;;  %v29_v2 = vld [vmem:[%s703_s0 + $0x10] sm:$0xff]   ;;  %v21_v3 = vld [vmem:[%s703_s0] sm:$0xff]   ;;  %v33_v4 = vld [vmem:[%s703_s0 + $0x18] sm:$0xff]  }
   0x6   :  { %30 = vst [vmem:[#allocation1 + $0x10] sm:$0xff] %v29_v2   ;;  %22 = vst [vmem:[#allocation1] sm:$0xff] %v21_v3   ;;  %v25_v5 = vld [vmem:[%s703_s0 + $0x8] sm:$0xff]   ;;  %v37_v7 = vld [vmem:[%s703_s0 + $0x20] sm:$0xff]  }
   0x7   :  { %34 = vst [vmem:[#allocation1 + $0x18] sm:$0xff] %v33_v4   ;;  %v41_v6 = vld [vmem:[%s703_s0 + $0x28] sm:$0xff]   ;;  %26 = vst [vmem:[#allocation1 + $0x8] sm:$0xff] %v25_v5  }
   0x8   :  { %42 = vst [vmem:[#allocation1 + $0x28] sm:$0xff] %v41_v6   ;;  %38 = vst [vmem:[#allocation1 + $0x20] sm:$0xff] %v37_v7  }
   0xd   :  { %v585_v8 = vld [vmem:[#allocation1 + $0x10] sm:$0xff]   ;;  %v593_v9 = vld [vmem:[#allocation1] sm:$0xff]  }
   0xe   :  { %v581_v10 = vld [vmem:[#allocation1 + $0x18] sm:$0xff]   ;;  %v586_v11 = vunpack.c.l.bf16 %v585_v8  ;;  %v587_v12 = vunpack.c.h.bf16 %v585_v8  ;;  %v594_v13 = vunpack.c.l.bf16 %v593_v9  ;;  %v595_v14 = vunpack.c.h.bf16 %v593_v9  ;;  %v589_v15 = vld [vmem:[#allocation1 + $0x8] sm:$0xff]  }
   0xf   :  { %v573_v16 = vld [vmem:[#allocation1 + $0x28] sm:$0xff]   ;;  %v582_v17 = vunpack.c.l.bf16 %v581_v10  ;;  %v583_v18 = vunpack.c.h.bf16 %v581_v10  ;;  %v590_v19 = vunpack.c.l.bf16 %v589_v15  ;;  %v591_v20 = vunpack.c.h.bf16 %v589_v15  ;;  %v577_v21 = vld [vmem:[#allocation1 + $0x20] sm:$0xff]  }
  0x10   :  { %v637_v22 = vpack.i.bf16 %v587_v12, %v586_v11  ;;  %v626_v23 = vpack.i.bf16 %v595_v14, %v594_v13  ;;  %v574_v24 = vunpack.c.l.bf16 %v573_v16  ;;  %v575_v25 = vunpack.c.h.bf16 %v573_v16 }
  0x11   :  { %v642_v26 = vpack.i.bf16 %v583_v18, %v582_v17  ;;  %v631_v27 = vpack.i.bf16 %v591_v20, %v590_v19  ;;  %v578_v28 = vunpack.c.l.bf16 %v577_v21  ;;  %v579_v29 = vunpack.c.h.bf16 %v577_v21 }
  0x12   :  { %638 = vperm.xlu1 %636, %v637_v22   ;;  %627 = vperm.xlu0 %4, %v626_v23   ;;  %v652_v30 = vpack.i.bf16 %v575_v25, %v574_v24 }
  0x13   :  { %v647_v31 = vpack.i.bf16 %v579_v29, %v578_v28 }
  0x16   :  { %643 = vperm.xlu1 %636, %v642_v26   ;;  %632 = vperm.xlu0 %4, %v631_v27  }
  0x1a   :  { %653 = vperm.xlu1 %636, %v652_v30   ;;  %648 = vperm.xlu0 %4, %v647_v31  }
  0x8d   :  { %v639_v32 = vpop.permute.xlu1 %638  ;;  %v628_v33 = vpop.permute.xlu0 %627 }
  0x8e   :  { %v641_v34 = vunpack.i.h.bf16 %v639_v32  ;;  %v640_v35 = vunpack.i.l.bf16 %v639_v32  ;;  %v630_v36 = vunpack.i.h.bf16 %v628_v33  ;;  %v629_v37 = vunpack.i.l.bf16 %v628_v33 }
  0x90   :  { %v609_v38 = vpack.c.bf16 %v641_v34, %v640_v35  ;;  %v599_v39 = vpack.c.bf16 %v630_v36, %v629_v37 }
  0x91   :  { %v644_v40 = vpop.permute.xlu1 %643  ;;  %v633_v41 = vpop.permute.xlu0 %632 }
  0x92   :  { %610 = vst [vmem:[#allocation3 + $0x10] sm:$0xff] %v609_v38   ;;  %600 = vst [vmem:[#allocation3] sm:$0xff] %v599_v39   ;;  %v646_v42 = vunpack.i.h.bf16 %v644_v40  ;;  %v645_v43 = vunpack.i.l.bf16 %v644_v40  ;;  %v635_v44 = vunpack.i.h.bf16 %v633_v41  ;;  %v634_v45 = vunpack.i.l.bf16 %v633_v41 }
  0x94   :  { %v614_v46 = vpack.c.bf16 %v646_v42, %v645_v43  ;;  %v604_v47 = vpack.c.bf16 %v635_v44, %v634_v45 }
  0x95   :  { %v654_v48 = vpop.permute.xlu1 %653  ;;  %v649_v49 = vpop.permute.xlu0 %648 }
  0x96   :  { %615 = vst [vmem:[#allocation3 + $0x18] sm:$0xff] %v614_v46   ;;  %605 = vst [vmem:[#allocation3 + $0x8] sm:$0xff] %v604_v47   ;;  %v656_v50 = vunpack.i.h.bf16 %v654_v48  ;;  %v655_v51 = vunpack.i.l.bf16 %v654_v48  ;;  %v651_v52 = vunpack.i.h.bf16 %v649_v49  ;;  %v650_v53 = vunpack.i.l.bf16 %v649_v49 }
  0x98   :  { %v624_v54 = vpack.c.bf16 %v656_v50, %v655_v51  ;;  %v619_v55 = vpack.c.bf16 %v651_v52, %v650_v53 }
  0x99   :  { %v473_v56 = vld [vmem:[#allocation3 + $0x10] sm:$0xff]   ;;  %v465_v57 = vld [vmem:[#allocation3] sm:$0xff]  }
  0x9a   :  { %474 = vst [vmem:[%s704_s1 + $0x10] sm:$0xff] %v473_v56   ;;  %466 = vst [vmem:[%s704_s1] sm:$0xff] %v465_v57  }
  0x9b   :  { %625 = vst [vmem:[#allocation3 + $0x28] sm:$0xff] %v624_v54   ;;  %620 = vst [vmem:[#allocation3 + $0x20] sm:$0xff] %v619_v55  }
  0x9d   :  { %v477_v58 = vld [vmem:[#allocation3 + $0x18] sm:$0xff]   ;;  %v469_v59 = vld [vmem:[#allocation3 + $0x8] sm:$0xff]  }
  0x9e   :  { %478 = vst [vmem:[%s704_s1 + $0x18] sm:$0xff] %v477_v58   ;;  %470 = vst [vmem:[%s704_s1 + $0x8] sm:$0xff] %v469_v59  }
  0xa2   :  { %v485_v60 = vld [vmem:[#allocation3 + $0x28] sm:$0xff]   ;;  %v481_v61 = vld [vmem:[#allocation3 + $0x20] sm:$0xff]  }
  0xa3   :  { %486 = vst [vmem:[%s704_s1 + $0x28] sm:$0xff] %v485_v60   ;;  %482 = vst [vmem:[%s704_s1 + $0x20] sm:$0xff] %v481_v61  }

</bundles_post_ra>
